<compile_context>
chip_gen: v7x
topology: tpu7x:2x2x1
jax: 0.10.0
libtpu: 0.0.40
codegen_flags: <defaults>
</compile_context>

<pallas_src>
import functools
import math

import jax
import jax.numpy as jnp
from jax.experimental import pallas as pl
from jax.experimental.pallas import tpu as pltpu


# ----------------------------------------------------------------------------
# In-kernel helpers
# ----------------------------------------------------------------------------
def _layer_norm(x, gamma, beta, eps=1e-5):
    mean = jnp.mean(x, axis=-1, keepdims=True)
    xc = x - mean
    var = jnp.mean(xc * xc, axis=-1, keepdims=True)
    return xc * jax.lax.rsqrt(var + eps) * gamma + beta


# ----------------------------------------------------------------------------
# Fused encoder-layer kernel (one grid step == one batch element)
# ----------------------------------------------------------------------------
def _encoder_layer_kernel(
    src_ref, pos_ref,                       # (1, S, D) f32 activations
    wqk_ref, bqk_ref,                       # (D, 2D) bf16 / (1, 2D) f32, Q scale folded in
    wv_ref, bv_ref,                         # (D, D)  bf16 / (1, D) f32
    wo_ref, bo_ref,                         # (D, D)  bf16 / (1, D) f32
    g1_ref, be1_ref,                        # LayerNorm1 (1, D) f32
    w1_ref, b1_ref,                         # (D, Dff) bf16 / (1, Dff) f32
    w2_ref, b2_ref,                         # (Dff, D) bf16 / (1, D) f32
    g2_ref, be2_ref,                        # LayerNorm2 (1, D) f32
    o_ref,                                  # (1, S, D) f32
    *, nhead, head_dim,
):
    f32, bf16 = jnp.float32, jnp.bfloat16
    _, S, D = src_ref.shape

    src = src_ref[0]                        # (S, D) f32
    pos = pos_ref[0]                        # (S, D) f32

    qk_in = (src + pos).astype(bf16)        # q = k = src + pos
    v_in = src.astype(bf16)                 # value = src

    # --- fused Q+K projection (one wide-N matmul) and V projection -----------
    qk = jnp.dot(qk_in, wqk_ref[...], preferred_element_type=f32) + bqk_ref[...]
    v = jnp.dot(v_in, wv_ref[...], preferred_element_type=f32) + bv_ref[...]

    # --- split heads once: (S, D) -> (H, S, Dh), single bf16 cast each -------
    qk_b = qk.astype(bf16)
    q3 = jnp.transpose(qk_b[:, :D].reshape(S, nhead, head_dim), (1, 0, 2))
    k3 = jnp.transpose(qk_b[:, D:].reshape(S, nhead, head_dim), (1, 0, 2))
    v3 = jnp.transpose(v.astype(bf16).reshape(S, nhead, head_dim), (1, 0, 2))

    # --- batched scaled-dot-product attention (scale folded into Wq) ---------
    s = jnp.einsum("hqd,hkd->hqk", q3, k3,
                   preferred_element_type=f32)          # (H, S, S) f32
    s = s - jnp.max(s, axis=-1, keepdims=True)
    p = jnp.exp(s)
    p = p * pl.reciprocal(jnp.sum(p, axis=-1, keepdims=True), approx=True)
    # attn-dropout is identity in eval mode.

    ctx = jnp.einsum("hqk,hkd->hqd", p.astype(bf16), v3,
                     preferred_element_type=f32)        # (H, S, Dh)
    ctx = jnp.transpose(ctx, (1, 0, 2)).reshape(S, D)   # (S, D)

    # --- output projection: one full-K (S,D)@(D,D) matmul ---------------------
    attn = jnp.dot(ctx.astype(bf16), wo_ref[...],
                   preferred_element_type=f32) + bo_ref[...]

    # --- residual + LayerNorm1 (dropout1 = identity) --------------------------
    x = _layer_norm(src + attn, g1_ref[...], be1_ref[...])

    # --- feed-forward: Linear1 -> ReLU -> Linear2 (dropout = identity) --------
    h1 = jnp.dot(x.astype(bf16), w1_ref[...],
                 preferred_element_type=f32) + b1_ref[...]
    h1 = jnp.maximum(h1, 0.0)
    ffn = jnp.dot(h1.astype(bf16), w2_ref[...],
                  preferred_element_type=f32) + b2_ref[...]

    # --- residual + LayerNorm2 (dropout2 = identity) --------------------------
    y = _layer_norm(x + ffn, g2_ref[...], be2_ref[...])

    o_ref[0] = y.astype(o_ref.dtype)


# ----------------------------------------------------------------------------
# Per-generation scoped-VMEM limit (raise above the 16/32 MiB defaults, stay
# inside v7x's 64 MiB physical VMEM).
# ----------------------------------------------------------------------------
def _pick_vmem_limit_bytes():
    try:
        cap = pltpu.get_tpu_info().vmem_capacity_bytes
    except Exception:
        cap = 128 * 1024 * 1024
    return int(min(96 * 1024 * 1024, cap * 3 // 4))


# ----------------------------------------------------------------------------
# Wrapper: layout glue + single pallas_call
# ----------------------------------------------------------------------------
def transformer_encoder_layer(params, src, pos=None, *, nhead,
                              batch_first=False):
    """src/pos: (S, B, D) by default (PyTorch nn.MultiheadAttention
    convention); pass batch_first=True for (B, S, D) to skip the HBM
    transpose passes."""
    if batch_first:
        B, S, D = src.shape
    else:
        S, B, D = src.shape
    assert D % nhead == 0
    head_dim = D // nhead
    Dff = params["linear1_weight"].shape[0]
    scale = 1.0 / math.sqrt(head_dim)

    f32, bf16 = jnp.float32, jnp.bfloat16

    if pos is None:
        pos = jnp.zeros_like(src)

    if batch_first:
        src_b = src.astype(f32)
        pos_b = pos.astype(f32)
    else:
        # (S, B, D) -> (B, S, D) so one grid step owns one batch element.
        src_b = jnp.transpose(src, (1, 0, 2)).astype(f32)
        pos_b = jnp.transpose(pos, (1, 0, 2)).astype(f32)

    # Split PyTorch in_proj, pre-transpose to x @ W layout, fold the attention
    # scale into the Q half, and fuse Q+K into one (D, 2D) weight.
    w_in = params["in_proj_weight"].astype(f32)          # (3D, D)
    b_in = params["in_proj_bias"].astype(f32)            # (3D,)
    wqk = jnp.concatenate(
        [(w_in[:D] * scale).T, w_in[D:2 * D].T], axis=1).astype(bf16)  # (D, 2D)
    bqk = jnp.concatenate(
        [b_in[:D] * scale, b_in[D:2 * D]]).reshape(1, 2 * D)
    wv_t = w_in[2 * D:].T.astype(bf16)                   # (D, D)
    bv = b_in[2 * D:].reshape(1, D)

    args = (
        src_b, pos_b,
        wqk, bqk, wv_t, bv,
        params["out_proj_weight"].T.astype(bf16),
        params["out_proj_bias"].reshape(1, D).astype(f32),
        params["norm1_weight"].reshape(1, D).astype(f32),
        params["norm1_bias"].reshape(1, D).astype(f32),
        params["linear1_weight"].T.astype(bf16),             # (D, Dff)
        params["linear1_bias"].reshape(1, Dff).astype(f32),
        params["linear2_weight"].T.astype(bf16),              # (Dff, D)
        params["linear2_bias"].reshape(1, D).astype(f32),
        params["norm2_weight"].reshape(1, D).astype(f32),
        params["norm2_bias"].reshape(1, D).astype(f32),
    )

    act_spec = pl.BlockSpec((1, S, D), lambda b: (b, 0, 0))
    # Weight/bias operands: constant index maps -> DMA'd once, VMEM-resident
    # across all grid steps.
    weight_specs = [pl.BlockSpec(a.shape, lambda b: (0, 0)) for a in args[2:]]

    out_b = pl.pallas_call(
        functools.partial(_encoder_layer_kernel, nhead=nhead,
                          head_dim=head_dim),
        out_shape=jax.ShapeDtypeStruct((B, S, D), jnp.float32),
        grid_spec=pltpu.PrefetchScalarGridSpec(
            num_scalar_prefetch=0,
            grid=(B,),
            in_specs=[act_spec, act_spec] + weight_specs,
            out_specs=act_spec,
        ),
        compiler_params=pltpu.CompilerParams(
            dimension_semantics=("parallel",),
            vmem_limit_bytes=_pick_vmem_limit_bytes(),
        ),
    )(*args)

    if batch_first:
        return out_b
    return jnp.transpose(out_b, (1, 0, 2))                  # back to (S, B, D)


# ----------------------------------------------------------------------------
# Pure-JAX reference (f32) of forward_post for validation
# ----------------------------------------------------------------------------
def reference_forward(params, src, pos, nhead):
    S, B, D = src.shape
    head_dim = D // nhead
    w_in, b_in = params["in_proj_weight"], params["in_proj_bias"]
    wq, wk, wv = w_in[:D], w_in[D:2 * D], w_in[2 * D:]
    bq, bk, bv = b_in[:D], b_in[D:2 * D], b_in[2 * D:]

    qk = src + pos
    q = qk @ wq.T + bq
    k = qk @ wk.T + bk
    v = src @ wv.T + bv

    def split(x):                      # (S, B, D) -> (B, H, S, Dh)
        return jnp.transpose(x.reshape(S, B, nhead, head_dim), (1, 2, 0, 3))

    qh, kh, vh = split(q), split(k), split(v)
    scores = jnp.einsum("bhqd,bhkd->bhqk", qh, kh) / math.sqrt(head_dim)
    p = jax.nn.softmax(scores, axis=-1)
    ctx = jnp.einsum("bhqk,bhkd->bhqd", p, vh)
    ctx = jnp.transpose(ctx, (2, 0, 1, 3)).reshape(S, B, D)
    attn = ctx @ params["out_proj_weight"].T + params["out_proj_bias"]

    def ln(x, g, b):
        m = jnp.mean(x, -1, keepdims=True)
        var = jnp.mean((x - m) ** 2, -1, keepdims=True)
        return (x - m) / jnp.sqrt(var + 1e-5) * g + b

    x = ln(src + attn, params["norm1_weight"], params["norm1_bias"])
    h = jax.nn.relu(x @ params["linear1_weight"].T + params["linear1_bias"])
    ffn = h @ params["linear2_weight"].T + params["linear2_bias"]
    return ln(x + ffn, params["norm2_weight"], params["norm2_bias"])


# ----------------------------------------------------------------------------
if __name__ == "__main__":
    S, B, D, NHEAD, DFF = 8, 2, 32, 4, 64

    key = jax.random.PRNGKey(0)
    ks = jax.random.split(key, 10)

    def uniform(k, shape, fan_in):
        bound = 1.0 / math.sqrt(fan_in)
        return jax.random.uniform(k, shape, jnp.float32, -bound, bound)

    params = {
        "in_proj_weight": uniform(ks[0], (3 * D, D), D),
        "in_proj_bias": uniform(ks[1], (3 * D,), D),
        "out_proj_weight": uniform(ks[2], (D, D), D),
        "out_proj_bias": uniform(ks[3], (D,), D),
        "linear1_weight": uniform(ks[4], (DFF, D), D),
        "linear1_bias": uniform(ks[5], (DFF,), D),
        "linear2_weight": uniform(ks[6], (D, DFF), DFF),
        "linear2_bias": uniform(ks[7], (D,), DFF),
        "norm1_weight": jnp.ones((D,), jnp.float32),
        "norm1_bias": jnp.zeros((D,), jnp.float32),
        "norm2_weight": jnp.ones((D,), jnp.float32),
        "norm2_bias": jnp.zeros((D,), jnp.float32),
    }

    src = jax.random.normal(ks[8], (S, B, D), jnp.float32)
    pos = 0.1 * jax.random.normal(ks[9], (S, B, D), jnp.float32)

    fwd = jax.jit(
        lambda p, s, pe: transformer_encoder_layer(p, s, pe, nhead=NHEAD))
    out = fwd(params, src, pos)
    jax.block_until_ready(out)

    ref = reference_forward(params, src, pos, NHEAD)
    err = float(jnp.max(jnp.abs(out - ref)))
    rel = err / max(float(jnp.max(jnp.abs(ref))), 1e-6)

    assert out.shape == (S, B, D)
    assert out.dtype == jnp.float32
    # bf16 matmuls + approx reciprocal -> inference-grade tolerance
    assert err < 0.2 and rel < 0.1, f"max abs err {err}, rel {rel}"
    print("KERNEL_OK")
</pallas_src>

<mosaic_0001>
module attributes {stable_mosaic.version = 11 : i64} {
  func.func @_encoder_layer_kernel(%arg0: i32, %arg1: memref<1x8x32xf32, #tpu.memory_space<vmem>>, %arg2: memref<1x8x32xf32, #tpu.memory_space<vmem>>, %arg3: memref<32x64xbf16, #tpu.memory_space<vmem>>, %arg4: memref<1x64xf32, #tpu.memory_space<vmem>>, %arg5: memref<32x32xbf16, #tpu.memory_space<vmem>>, %arg6: memref<1x32xf32, #tpu.memory_space<vmem>>, %arg7: memref<32x32xbf16, #tpu.memory_space<vmem>>, %arg8: memref<1x32xf32, #tpu.memory_space<vmem>>, %arg9: memref<1x32xf32, #tpu.memory_space<vmem>>, %arg10: memref<1x32xf32, #tpu.memory_space<vmem>>, %arg11: memref<32x64xbf16, #tpu.memory_space<vmem>>, %arg12: memref<1x64xf32, #tpu.memory_space<vmem>>, %arg13: memref<64x32xbf16, #tpu.memory_space<vmem>>, %arg14: memref<1x32xf32, #tpu.memory_space<vmem>>, %arg15: memref<1x32xf32, #tpu.memory_space<vmem>>, %arg16: memref<1x32xf32, #tpu.memory_space<vmem>>, %arg17: memref<1x8x32xf32, #tpu.memory_space<vmem>>) attributes {dimension_semantics = [#tpu.dimension_semantics<parallel>], iteration_bounds = array<i64: 2>, scalar_prefetch = 0 : i64, scratch_operands = 0 : i64, tpu.core_type = #tpu.core_type<tc>, window_params = [{transform_indices = @transform_0, window_bounds = array<i64: 1, 8, 32>}, {transform_indices = @transform_1, window_bounds = array<i64: 1, 8, 32>}, {pipeline_mode = #tpu.pipeline_mode<synchronous>, transform_indices = @transform_2, window_bounds = array<i64: 32, 64>}, {pipeline_mode = #tpu.pipeline_mode<synchronous>, transform_indices = @transform_3, window_bounds = array<i64: 1, 64>}, {pipeline_mode = #tpu.pipeline_mode<synchronous>, transform_indices = @transform_4, window_bounds = array<i64: 32, 32>}, {pipeline_mode = #tpu.pipeline_mode<synchronous>, transform_indices = @transform_5, window_bounds = array<i64: 1, 32>}, {pipeline_mode = #tpu.pipeline_mode<synchronous>, transform_indices = @transform_6, window_bounds = array<i64: 32, 32>}, {pipeline_mode = #tpu.pipeline_mode<synchronous>, transform_indices = @transform_7, window_bounds = array<i64: 1, 32>}, {pipeline_mode = #tpu.pipeline_mode<synchronous>, transform_indices = @transform_8, window_bounds = array<i64: 1, 32>}, {pipeline_mode = #tpu.pipeline_mode<synchronous>, transform_indices = @transform_9, window_bounds = array<i64: 1, 32>}, {pipeline_mode = #tpu.pipeline_mode<synchronous>, transform_indices = @transform_10, window_bounds = array<i64: 32, 64>}, {pipeline_mode = #tpu.pipeline_mode<synchronous>, transform_indices = @transform_11, window_bounds = array<i64: 1, 64>}, {pipeline_mode = #tpu.pipeline_mode<synchronous>, transform_indices = @transform_12, window_bounds = array<i64: 64, 32>}, {pipeline_mode = #tpu.pipeline_mode<synchronous>, transform_indices = @transform_13, window_bounds = array<i64: 1, 32>}, {pipeline_mode = #tpu.pipeline_mode<synchronous>, transform_indices = @transform_14, window_bounds = array<i64: 1, 32>}, {pipeline_mode = #tpu.pipeline_mode<synchronous>, transform_indices = @transform_15, window_bounds = array<i64: 1, 32>}, {transform_indices = @transform_16, window_bounds = array<i64: 1, 8, 32>}]} {
    %c0 = arith.constant 0 : index
    %c0_0 = arith.constant 0 : index
    %c0_1 = arith.constant 0 : index
    %0 = vector.load %arg1[%c0, %c0_0, %c0_1] : memref<1x8x32xf32, #tpu.memory_space<vmem>>, vector<1x8x32xf32>
    %1 = vector.shape_cast %0 : vector<1x8x32xf32> to vector<8x32xf32>
    %c0_2 = arith.constant 0 : index
    %c0_3 = arith.constant 0 : index
    %c0_4 = arith.constant 0 : index
    %2 = vector.load %arg2[%c0_2, %c0_3, %c0_4] : memref<1x8x32xf32, #tpu.memory_space<vmem>>, vector<1x8x32xf32>
    %3 = vector.shape_cast %2 : vector<1x8x32xf32> to vector<8x32xf32>
    %4 = arith.addf %1, %3 : vector<8x32xf32>
    %5 = arith.truncf %4 : vector<8x32xf32> to vector<8x32xbf16>
    %6 = arith.truncf %1 : vector<8x32xf32> to vector<8x32xbf16>
    %c0_5 = arith.constant 0 : index
    %c0_6 = arith.constant 0 : index
    %7 = vector.load %arg3[%c0_5, %c0_6] : memref<32x64xbf16, #tpu.memory_space<vmem>>, vector<32x64xbf16>
    %cst = arith.constant dense<0.000000e+00> : vector<8x64xf32>
    %8 = tpu.matmul %5, %7, %cst {dimension_numbers = #tpu.dot_dimension_numbers<[1], [0], [0], [1], [0, 0, 1, 1], [], []>} : vector<8x32xbf16>, vector<32x64xbf16>, vector<8x64xf32> -> vector<8x64xf32>
    %c0_7 = arith.constant 0 : index
    %c0_8 = arith.constant 0 : index
    %9 = vector.load %arg4[%c0_7, %c0_8] : memref<1x64xf32, #tpu.memory_space<vmem>>, vector<1x64xf32>
    %10 = vector.broadcast %9 : vector<1x64xf32> to vector<8x64xf32>
    %11 = arith.addf %8, %10 : vector<8x64xf32>
    %c0_9 = arith.constant 0 : index
    %c0_10 = arith.constant 0 : index
    %12 = vector.load %arg5[%c0_9, %c0_10] : memref<32x32xbf16, #tpu.memory_space<vmem>>, vector<32x32xbf16>
    %cst_11 = arith.constant dense<0.000000e+00> : vector<8x32xf32>
    %13 = tpu.matmul %6, %12, %cst_11 {dimension_numbers = #tpu.dot_dimension_numbers<[1], [0], [0], [1], [0, 0, 1, 1], [], []>} : vector<8x32xbf16>, vector<32x32xbf16>, vector<8x32xf32> -> vector<8x32xf32>
    %c0_12 = arith.constant 0 : index
    %c0_13 = arith.constant 0 : index
    %14 = vector.load %arg6[%c0_12, %c0_13] : memref<1x32xf32, #tpu.memory_space<vmem>>, vector<1x32xf32>
    %15 = vector.broadcast %14 : vector<1x32xf32> to vector<8x32xf32>
    %16 = arith.addf %13, %15 : vector<8x32xf32>
    %17 = arith.truncf %11 : vector<8x64xf32> to vector<8x64xbf16>
    %18 = vector.extract_strided_slice %17 {offsets = [0, 0], sizes = [8, 32], strides = [1, 1]} : vector<8x64xbf16> to vector<8x32xbf16>
    %19 = vector.shape_cast %18 : vector<8x32xbf16> to vector<8x4x8xbf16>
    %20 = tpu.transpose %19, [1, 0, 2] : vector<8x4x8xbf16> -> vector<4x8x8xbf16>
    %21 = vector.extract_strided_slice %17 {offsets = [0, 32], sizes = [8, 32], strides = [1, 1]} : vector<8x64xbf16> to vector<8x32xbf16>
    %22 = vector.shape_cast %21 : vector<8x32xbf16> to vector<8x4x8xbf16>
    %23 = tpu.transpose %22, [1, 0, 2] : vector<8x4x8xbf16> -> vector<4x8x8xbf16>
    %24 = arith.truncf %16 : vector<8x32xf32> to vector<8x32xbf16>
    %25 = vector.shape_cast %24 : vector<8x32xbf16> to vector<8x4x8xbf16>
    %26 = tpu.transpose %25, [1, 0, 2] : vector<8x4x8xbf16> -> vector<4x8x8xbf16>
    "tpu.trace_start"() <{level = 10 : i32, message = "hqd,hkd->hqk"}> : () -> ()
    %cst_14 = arith.constant dense<0.000000e+00> : vector<4x8x8xf32>
    %27 = tpu.matmul %20, %23, %cst_14 {dimension_numbers = #tpu.dot_dimension_numbers<[2], [2], [1], [1], [0, 0, 0, 1, 1, 1], [0], [0]>} : vector<4x8x8xbf16>, vector<4x8x8xbf16>, vector<4x8x8xf32> -> vector<4x8x8xf32>
    "tpu.trace_stop"() : () -> ()
    %cst_15 = arith.constant dense<0xFF800000> : vector<4x8xf32>
    %28 = vector.multi_reduction <maximumf>, %27, %cst_15 [2] : vector<4x8x8xf32> to vector<4x8xf32>
    %29 = vector.shape_cast %28 : vector<4x8xf32> to vector<4x8x1xf32>
    %30 = vector.broadcast %29 : vector<4x8x1xf32> to vector<4x8x8xf32>
    %31 = arith.subf %27, %30 : vector<4x8x8xf32>
    %32 = math.exp %31 : vector<4x8x8xf32>
    %cst_16 = arith.constant dense<0.000000e+00> : vector<4x8xf32>
    %33 = vector.multi_reduction <add>, %32, %cst_16 [2] : vector<4x8x8xf32> to vector<4x8xf32>
    %34 = vector.shape_cast %33 : vector<4x8xf32> to vector<4x8x1xf32>
    %35 = tpu.reciprocal %34 {approx = true} : vector<4x8x1xf32> -> vector<4x8x1xf32>
    %36 = vector.broadcast %35 : vector<4x8x1xf32> to vector<4x8x8xf32>
    %37 = arith.mulf %32, %36 : vector<4x8x8xf32>
    %38 = arith.truncf %37 : vector<4x8x8xf32> to vector<4x8x8xbf16>
    "tpu.trace_start"() <{level = 10 : i32, message = "hqk,hkd->hqd"}> : () -> ()
    %cst_17 = arith.constant dense<0.000000e+00> : vector<4x8x8xf32>
    %39 = tpu.matmul %38, %26, %cst_17 {dimension_numbers = #tpu.dot_dimension_numbers<[2], [1], [1], [2], [0, 0, 0, 1, 1, 2], [0], [0]>} : vector<4x8x8xbf16>, vector<4x8x8xbf16>, vector<4x8x8xf32> -> vector<4x8x8xf32>
    "tpu.trace_stop"() : () -> ()
    %40 = tpu.transpose %39, [1, 0, 2] : vector<4x8x8xf32> -> vector<8x4x8xf32>
    %41 = vector.shape_cast %40 : vector<8x4x8xf32> to vector<8x32xf32>
    %42 = arith.truncf %41 : vector<8x32xf32> to vector<8x32xbf16>
    %c0_18 = arith.constant 0 : index
    %c0_19 = arith.constant 0 : index
    %43 = vector.load %arg7[%c0_18, %c0_19] : memref<32x32xbf16, #tpu.memory_space<vmem>>, vector<32x32xbf16>
    %cst_20 = arith.constant dense<0.000000e+00> : vector<8x32xf32>
    %44 = tpu.matmul %42, %43, %cst_20 {dimension_numbers = #tpu.dot_dimension_numbers<[1], [0], [0], [1], [0, 0, 1, 1], [], []>} : vector<8x32xbf16>, vector<32x32xbf16>, vector<8x32xf32> -> vector<8x32xf32>
    %c0_21 = arith.constant 0 : index
    %c0_22 = arith.constant 0 : index
    %45 = vector.load %arg8[%c0_21, %c0_22] : memref<1x32xf32, #tpu.memory_space<vmem>>, vector<1x32xf32>
    %46 = vector.broadcast %45 : vector<1x32xf32> to vector<8x32xf32>
    %47 = arith.addf %44, %46 : vector<8x32xf32>
    %48 = arith.addf %1, %47 : vector<8x32xf32>
    %c0_23 = arith.constant 0 : index
    %c0_24 = arith.constant 0 : index
    %49 = vector.load %arg9[%c0_23, %c0_24] : memref<1x32xf32, #tpu.memory_space<vmem>>, vector<1x32xf32>
    %c0_25 = arith.constant 0 : index
    %c0_26 = arith.constant 0 : index
    %50 = vector.load %arg10[%c0_25, %c0_26] : memref<1x32xf32, #tpu.memory_space<vmem>>, vector<1x32xf32>
    %cst_27 = arith.constant dense<0.000000e+00> : vector<8xf32>
    %51 = vector.multi_reduction <add>, %48, %cst_27 [1] : vector<8x32xf32> to vector<8xf32>
    %52 = vector.shape_cast %51 : vector<8xf32> to vector<8x1xf32>
    %cst_28 = arith.constant 3.200000e+01 : f32
    %53 = vector.broadcast %cst_28 : f32 to vector<8x1xf32>
    %54 = arith.divf %52, %53 : vector<8x1xf32>
    %55 = vector.broadcast %54 : vector<8x1xf32> to vector<8x32xf32>
    %56 = arith.subf %48, %55 : vector<8x32xf32>
    %57 = arith.mulf %56, %56 : vector<8x32xf32>
    %cst_29 = arith.constant dense<0.000000e+00> : vector<8xf32>
    %58 = vector.multi_reduction <add>, %57, %cst_29 [1] : vector<8x32xf32> to vector<8xf32>
    %59 = vector.shape_cast %58 : vector<8xf32> to vector<8x1xf32>
    %cst_30 = arith.constant 3.200000e+01 : f32
    %60 = vector.broadcast %cst_30 : f32 to vector<8x1xf32>
    %61 = arith.divf %59, %60 : vector<8x1xf32>
    %cst_31 = arith.constant 9.99999974E-6 : f32
    %62 = vector.broadcast %cst_31 : f32 to vector<8x1xf32>
    %63 = arith.addf %61, %62 : vector<8x1xf32>
    %64 = math.rsqrt %63 : vector<8x1xf32>
    %65 = vector.broadcast %64 : vector<8x1xf32> to vector<8x32xf32>
    %66 = arith.mulf %56, %65 : vector<8x32xf32>
    %67 = vector.broadcast %49 : vector<1x32xf32> to vector<8x32xf32>
    %68 = arith.mulf %66, %67 : vector<8x32xf32>
    %69 = vector.broadcast %50 : vector<1x32xf32> to vector<8x32xf32>
    %70 = arith.addf %68, %69 : vector<8x32xf32>
    %71 = arith.truncf %70 : vector<8x32xf32> to vector<8x32xbf16>
    %c0_32 = arith.constant 0 : index
    %c0_33 = arith.constant 0 : index
    %72 = vector.load %arg11[%c0_32, %c0_33] : memref<32x64xbf16, #tpu.memory_space<vmem>>, vector<32x64xbf16>
    %cst_34 = arith.constant dense<0.000000e+00> : vector<8x64xf32>
    %73 = tpu.matmul %71, %72, %cst_34 {dimension_numbers = #tpu.dot_dimension_numbers<[1], [0], [0], [1], [0, 0, 1, 1], [], []>} : vector<8x32xbf16>, vector<32x64xbf16>, vector<8x64xf32> -> vector<8x64xf32>
    %c0_35 = arith.constant 0 : index
    %c0_36 = arith.constant 0 : index
    %74 = vector.load %arg12[%c0_35, %c0_36] : memref<1x64xf32, #tpu.memory_space<vmem>>, vector<1x64xf32>
    %75 = vector.broadcast %74 : vector<1x64xf32> to vector<8x64xf32>
    %76 = arith.addf %73, %75 : vector<8x64xf32>
    %cst_37 = arith.constant 0.000000e+00 : f32
    %77 = vector.broadcast %cst_37 : f32 to vector<8x64xf32>
    %78 = arith.maximumf %76, %77 : vector<8x64xf32>
    %79 = arith.truncf %78 : vector<8x64xf32> to vector<8x64xbf16>
    %c0_38 = arith.constant 0 : index
    %c0_39 = arith.constant 0 : index
    %80 = vector.load %arg13[%c0_38, %c0_39] : memref<64x32xbf16, #tpu.memory_space<vmem>>, vector<64x32xbf16>
    %cst_40 = arith.constant dense<0.000000e+00> : vector<8x32xf32>
    %81 = tpu.matmul %79, %80, %cst_40 {dimension_numbers = #tpu.dot_dimension_numbers<[1], [0], [0], [1], [0, 0, 1, 1], [], []>} : vector<8x64xbf16>, vector<64x32xbf16>, vector<8x32xf32> -> vector<8x32xf32>
    %c0_41 = arith.constant 0 : index
    %c0_42 = arith.constant 0 : index
    %82 = vector.load %arg14[%c0_41, %c0_42] : memref<1x32xf32, #tpu.memory_space<vmem>>, vector<1x32xf32>
    %83 = vector.broadcast %82 : vector<1x32xf32> to vector<8x32xf32>
    %84 = arith.addf %81, %83 : vector<8x32xf32>
    %85 = arith.addf %70, %84 : vector<8x32xf32>
    %c0_43 = arith.constant 0 : index
    %c0_44 = arith.constant 0 : index
    %86 = vector.load %arg15[%c0_43, %c0_44] : memref<1x32xf32, #tpu.memory_space<vmem>>, vector<1x32xf32>
    %c0_45 = arith.constant 0 : index
    %c0_46 = arith.constant 0 : index
    %87 = vector.load %arg16[%c0_45, %c0_46] : memref<1x32xf32, #tpu.memory_space<vmem>>, vector<1x32xf32>
    %cst_47 = arith.constant dense<0.000000e+00> : vector<8xf32>
    %88 = vector.multi_reduction <add>, %85, %cst_47 [1] : vector<8x32xf32> to vector<8xf32>
    %89 = vector.shape_cast %88 : vector<8xf32> to vector<8x1xf32>
    %cst_48 = arith.constant 3.200000e+01 : f32
    %90 = vector.broadcast %cst_48 : f32 to vector<8x1xf32>
    %91 = arith.divf %89, %90 : vector<8x1xf32>
    %92 = vector.broadcast %91 : vector<8x1xf32> to vector<8x32xf32>
    %93 = arith.subf %85, %92 : vector<8x32xf32>
    %94 = arith.mulf %93, %93 : vector<8x32xf32>
    %cst_49 = arith.constant dense<0.000000e+00> : vector<8xf32>
    %95 = vector.multi_reduction <add>, %94, %cst_49 [1] : vector<8x32xf32> to vector<8xf32>
    %96 = vector.shape_cast %95 : vector<8xf32> to vector<8x1xf32>
    %cst_50 = arith.constant 3.200000e+01 : f32
    %97 = vector.broadcast %cst_50 : f32 to vector<8x1xf32>
    %98 = arith.divf %96, %97 : vector<8x1xf32>
    %cst_51 = arith.constant 9.99999974E-6 : f32
    %99 = vector.broadcast %cst_51 : f32 to vector<8x1xf32>
    %100 = arith.addf %98, %99 : vector<8x1xf32>
    %101 = math.rsqrt %100 : vector<8x1xf32>
    %102 = vector.broadcast %101 : vector<8x1xf32> to vector<8x32xf32>
    %103 = arith.mulf %93, %102 : vector<8x32xf32>
    %104 = vector.broadcast %86 : vector<1x32xf32> to vector<8x32xf32>
    %105 = arith.mulf %103, %104 : vector<8x32xf32>
    %106 = vector.broadcast %87 : vector<1x32xf32> to vector<8x32xf32>
    %107 = arith.addf %105, %106 : vector<8x32xf32>
    %c0_52 = arith.constant 0 : index
    %c0_53 = arith.constant 0 : index
    %c0_54 = arith.constant 0 : index
    %108 = vector.load %arg17[%c0_52, %c0_53, %c0_54] : memref<1x8x32xf32, #tpu.memory_space<vmem>>, vector<1x8x32xf32>
    %109 = vector.shape_cast %108 : vector<1x8x32xf32> to vector<8x32xf32>
    %110 = vector.shape_cast %107 : vector<8x32xf32> to vector<1x8x32xf32>
    tpu.vector_store %arg17[%c0_52, %c0_53, %c0_54], %110 {strides = array<i32>} : memref<1x8x32xf32, #tpu.memory_space<vmem>>, vector<1x8x32xf32>,
    return
  }
  func.func @transform_0(%arg0: i32) -> (i32, i32, i32) {
    %c0_i32 = arith.constant 0 : i32
    %c0_i32_0 = arith.constant 0 : i32
    %c0_i32_1 = arith.constant 0 : i32
    return %arg0, %c0_i32, %c0_i32_0 : i32, i32, i32
  }
  func.func @transform_1(%arg0: i32) -> (i32, i32, i32) {
    %c0_i32 = arith.constant 0 : i32
    %c0_i32_0 = arith.constant 0 : i32
    %c0_i32_1 = arith.constant 0 : i32
    return %arg0, %c0_i32, %c0_i32_0 : i32, i32, i32
  }
  func.func @transform_2(%arg0: i32) -> (i32, i32) {
    %c0_i32 = arith.constant 0 : i32
    %c0_i32_0 = arith.constant 0 : i32
    %c0_i32_1 = arith.constant 0 : i32
    return %c0_i32, %c0_i32_0 : i32, i32
  }
  func.func @transform_3(%arg0: i32) -> (i32, i32) {
    %c0_i32 = arith.constant 0 : i32
    %c0_i32_0 = arith.constant 0 : i32
    %c0_i32_1 = arith.constant 0 : i32
    return %c0_i32, %c0_i32_0 : i32, i32
  }
  func.func @transform_4(%arg0: i32) -> (i32, i32) {
    %c0_i32 = arith.constant 0 : i32
    %c0_i32_0 = arith.constant 0 : i32
    %c0_i32_1 = arith.constant 0 : i32
    return %c0_i32, %c0_i32_0 : i32, i32
  }
  func.func @transform_5(%arg0: i32) -> (i32, i32) {
    %c0_i32 = arith.constant 0 : i32
    %c0_i32_0 = arith.constant 0 : i32
    %c0_i32_1 = arith.constant 0 : i32
    return %c0_i32, %c0_i32_0 : i32, i32
  }
  func.func @transform_6(%arg0: i32) -> (i32, i32) {
    %c0_i32 = arith.constant 0 : i32
    %c0_i32_0 = arith.constant 0 : i32
    %c0_i32_1 = arith.constant 0 : i32
    return %c0_i32, %c0_i32_0 : i32, i32
  }
  func.func @transform_7(%arg0: i32) -> (i32, i32) {
    %c0_i32 = arith.constant 0 : i32
    %c0_i32_0 = arith.constant 0 : i32
    %c0_i32_1 = arith.constant 0 : i32
    return %c0_i32, %c0_i32_0 : i32, i32
  }
  func.func @transform_8(%arg0: i32) -> (i32, i32) {
    %c0_i32 = arith.constant 0 : i32
    %c0_i32_0 = arith.constant 0 : i32
    %c0_i32_1 = arith.constant 0 : i32
    return %c0_i32, %c0_i32_0 : i32, i32
  }
  func.func @transform_9(%arg0: i32) -> (i32, i32) {
    %c0_i32 = arith.constant 0 : i32
    %c0_i32_0 = arith.constant 0 : i32
    %c0_i32_1 = arith.constant 0 : i32
    return %c0_i32, %c0_i32_0 : i32, i32
  }
  func.func @transform_10(%arg0: i32) -> (i32, i32) {
    %c0_i32 = arith.constant 0 : i32
    %c0_i32_0 = arith.constant 0 : i32
    %c0_i32_1 = arith.constant 0 : i32
    return %c0_i32, %c0_i32_0 : i32, i32
  }
  func.func @transform_11(%arg0: i32) -> (i32, i32) {
    %c0_i32 = arith.constant 0 : i32
    %c0_i32_0 = arith.constant 0 : i32
    %c0_i32_1 = arith.constant 0 : i32
    return %c0_i32, %c0_i32_0 : i32, i32
  }
  func.func @transform_12(%arg0: i32) -> (i32, i32) {
    %c0_i32 = arith.constant 0 : i32
    %c0_i32_0 = arith.constant 0 : i32
    %c0_i32_1 = arith.constant 0 : i32
    return %c0_i32, %c0_i32_0 : i32, i32
  }
  func.func @transform_13(%arg0: i32) -> (i32, i32) {
    %c0_i32 = arith.constant 0 : i32
    %c0_i32_0 = arith.constant 0 : i32
    %c0_i32_1 = arith.constant 0 : i32
    return %c0_i32, %c0_i32_0 : i32, i32
  }
  func.func @transform_14(%arg0: i32) -> (i32, i32) {
    %c0_i32 = arith.constant 0 : i32
    %c0_i32_0 = arith.constant 0 : i32
    %c0_i32_1 = arith.constant 0 : i32
    return %c0_i32, %c0_i32_0 : i32, i32
  }
  func.func @transform_15(%arg0: i32) -> (i32, i32) {
    %c0_i32 = arith.constant 0 : i32
    %c0_i32_0 = arith.constant 0 : i32
    %c0_i32_1 = arith.constant 0 : i32
    return %c0_i32, %c0_i32_0 : i32, i32
  }
  func.func @transform_16(%arg0: i32) -> (i32, i32, i32) {
    %c0_i32 = arith.constant 0 : i32
    %c0_i32_0 = arith.constant 0 : i32
    %c0_i32_1 = arith.constant 0 : i32
    return %arg0, %c0_i32, %c0_i32_0 : i32, i32, i32
  }
}

</mosaic_0001>

<bundles_post_ra>
// kernel: _lambda_.1
= control target key start
LH: loop header
LB: loop body
LE: loop exit
PB: predicated region body
PF: predicated region fallthrough
CT: control target
= control target key end

     0   :  { %s4374_s0 = inlined_call_operand.hbm [shape: f32[2,8,32], index: 0, kind: input, shape index: {}]   ;;  %s4375_s1 = inlined_call_operand.hbm [shape: f32[2,8,32], index: 1, kind: input, shape index: {}]   ;;  %s4376_s2 = inlined_call_operand.hbm [shape: bf16[32,64], index: 2, kind: input, shape index: {}]   ;;  %s4377_s3 = inlined_call_operand.hbm [shape: f32[1,64], index: 3, kind: input, shape index: {}]   ;;  %s4378_s4 = inlined_call_operand.hbm [shape: bf16[32,32], index: 4, kind: input, shape index: {}]   ;;  %s4379_s5 = inlined_call_operand.hbm [shape: f32[1,32], index: 5, kind: input, shape index: {}]   ;;  %s4380_s6 = inlined_call_operand.hbm [shape: bf16[32,32], index: 6, kind: input, shape index: {}]   ;;  %s4381_s7 = inlined_call_operand.hbm [shape: f32[1,32], index: 7, kind: input, shape index: {}]   ;;  %s4382_s8 = inlined_call_operand.hbm [shape: f32[1,32], index: 8, kind: input, shape index: {}]   ;;  %s4383_s9 = inlined_call_operand.hbm [shape: f32[1,32], index: 9, kind: input, shape index: {}]   ;;  %s4384_s10 = inlined_call_operand.hbm [shape: bf16[32,64], index: 10, kind: input, shape index: {}]   ;;  %s4385_s11 = inlined_call_operand.hbm [shape: f32[1,64], index: 11, kind: input, shape index: {}]   ;;  %s4386_s12 = inlined_call_operand.hbm [shape: bf16[64,32], index: 12, kind: input, shape index: {}]   ;;  %s4387_s13 = inlined_call_operand.hbm [shape: f32[1,32], index: 13, kind: input, shape index: {}]   ;;  %s4388_s14 = inlined_call_operand.hbm [shape: f32[1,32], index: 14, kind: input, shape index: {}]   ;;  %s4389_s15 = inlined_call_operand.hbm [shape: f32[1,32], index: 15, kind: input, shape index: {}]   ;;  %s4390_s16 = inlined_call_operand.hbm [shape: f32[2,8,32], index: 16, kind: output, shape index: {}]  }
   0x1   :  { %4406 = sst [smem:[#allocation45_spill]] %s4374_s0 }
   0x2   :  { %4407 = sst [smem:[#allocation46_spill]] %s4375_s1 }
   0x3   :  { %4408 = sst [smem:[#allocation47_spill]] %s4376_s2 }
   0x4   :  { %4409 = sst [smem:[#allocation48_spill]] %s4377_s3 }
   0x5   :  { %4410 = sst [smem:[#allocation49_spill]] %s4378_s4 }
   0x6   :  { %4411 = sst [smem:[#allocation50_spill]] %s4379_s5 }
   0x7   :  { %4412 = sst [smem:[#allocation51_spill]] %s4380_s6 }
   0x8   :  { %4413 = sst [smem:[#allocation52_spill]] %s4381_s7 }
   0x9   :  { %4414 = sst [smem:[#allocation53_spill]] %s4382_s8 }
   0xa   :  { %4415 = sst [smem:[#allocation54_spill]] %s4390_s16 }
   0xb   :  { %21 = vsyncpa [#allocation3], 0 }
   0xc   :  { %23 = vsyncpa [#allocation3 + $0x1], 0 }
   0xd   :  { %24 = vsyncpa [#allocation6], 0 }
   0xe   :  { %26 = vsyncpa [#allocation6 + $0x1], 0 }
   0xf   :  { %27 = vsyncpa [#allocation9], 0 }
  0x10   :  { %28 = vsyncpa [#allocation12], 0 }
  0x11   :  { %29 = vsyncpa [#allocation15], 0 }
  0x12   :  { %30 = vsyncpa [#allocation18], 0 }
  0x13   :  { %31 = vsyncpa [#allocation21], 0 }
  0x14   :  { %32 = vsyncpa [#allocation24], 0 }
  0x15   :  { %33 = vsyncpa [#allocation27], 0 }
  0x16   :  { %34 = vsyncpa [#allocation4], 0 }
  0x17   :  { %36 = vsyncpa [#allocation4 + $0x1], 0  ;;  %s3612_s21 = smov 0   ;;  %s3614_s22 = smov 0  }
  0x18   :  { %s3616_s23 = smov 0   ;;  %s3618_s24 = smov 0  }
  0x19 LB: > { %4416 = sst [smem:[#allocation40_spill]] %s3482_s21  ;;  %s3496_s25 = smov [#allocation7]   ;;  %s3494_s24 = sphi %s3618_s24, %s4473_s24   ;;  %s3490_s23 = sphi %s3616_s23, %s4472_s23   ;;  %s3486_s22 = sphi %s3614_s22, %s4471_s22   ;;  %s3482_s21 = sphi %s3612_s21, %s4470_s21  }
  0x1a   : > { %4417 = sst [smem:[#allocation41_spill]] %s3486_s22  ;;  %s431_s26 = sshll.u32 %s3496_s25, 4  ;;  %s3638_s26 = int_to_ptr.vmem [resolvable:$true] %s431_s26 }
  0x1b   : > { %4418 = sst [smem:[#allocation42_spill]] %s3490_s23  ;;  %s3633_s27 = sadd.s32 4294967295, %s3494_s24  }
  0x1c   : > { %4419 = sst [smem:[#allocation43_spill]] %s3633_s27  ;;  %p2499_p0 = scmp.ge.s32.totalorder %s3494_s24, 1 }
  0x1d   : > { %p4402_p1 = scmp.eq.s32.totalorder %s3633_s27, 0  ;;  %p419_p2 = scmp.lt.s32.totalorder %s3494_s24, 3 }
  0x1e   : > { %s3497_s29 = smov [#allocation8]   ;;  %s3498_s17 = smov [#allocation11]  }
  0x1f   : > { %p3640_p3 = pnand %p2499_p0, %p419_p2  ;;  %s445_s30 = sshll.u32 %s3497_s29, 4  ;;  %s3653_s30 = int_to_ptr.vmem [resolvable:$true] %s445_s30 }
  0x20   : > { %s469_s18 = sshll.u32 %s3498_s17, 4  ;;  %s4423_s2 = sld [smem:[#allocation47_spill]]  ;;  %s3655_s18 = int_to_ptr.vmem [resolvable:$true] %s469_s18 }
  0x21   : > { %s4420_s28 = scalar_select %p3640_p3, 1, 0 }
  0x22   : > { %p2764_p5 = pneg %p3640_p3 }
  0x23   : > { %4421 = sst [smem:[#allocation44_spill]] %s4420_s28 }
  0x24   : > { %p3649_p6 = pnand %p2764_p5, %p4402_p1 }
  0x26   : > { %s2940_s25 = scalar_lea.hbm %s4423_s2, 256  ;;  %p3665_p8 = pneg %p3649_p6 }
  0x27   : > { %p2941_p7 = scmp.ne.s32.totalorder %s4423_s2, %s2940_s25  ;;  %p2947_p11 = scmp.lt.u32.totalorder %s2940_s25, %s4423_s2 }
  0x29   : > { %p2943_p9 = pnand %p3665_p8, %p2941_p7 }
  0x2b   : > { %p2944_p10 = pneg %p2943_p9 }
  0x2d   : > { %p2949_p12 = pnand %p2947_p11, %p2944_p10 }
  0x2f   : > { %2952 = shalt.err (!%p2949_p12)
}
  0x30   : > { %s2953_s16 = scalar_lea.vmem %s3638_s26, 256  ;;  %p2961_p5 = scmp.lt.s32.totalorder %s3638_s26, %s3638_s26 }
  0x31   : > { %p2954_p13 = scmp.ne.s32.totalorder %s3638_s26, %s2953_s16  ;;  %p2962_p4 = scmp.lt.s32.totalorder %s2953_s16, %s2953_s16 }
  0x33   : > { %p2956_p0 = pnand %p2954_p13, %p3665_p8  ;;  %p2963_p7 = por %p2962_p4, %p2961_p5 }
  0x35   : > { %p2957_p2 = pneg %p2956_p0 }
  0x37   : > { %p2964_p9 = pnand %p2963_p7, %p2957_p2 }
  0x39   : > { %2967 = shalt.err (!%p2964_p9)
}
  0x3a   : > { %s4400_s28 = smov 64   ;;  %s3500_s1 = smov 4  }
  0x3b   : > { %2767 = dma.hbm_to_vmem [thread:$0]  (!%p3649_p6), %s4423_s2, 256, %s3638_s26, [#allocation6], %s4400_s28, %s4400_s28, %s3500_s1  }
  0x3c   : > { %s4425_s3 = sld [smem:[#allocation48_spill]] }
  0x42   : > { %s2968_s16 = scalar_lea.hbm %s4425_s3, 16 }
  0x43   : > { %p2969_p4 = scmp.ne.s32.totalorder %s4425_s3, %s2968_s16  ;;  %p2975_p12 = scmp.lt.u32.totalorder %s2968_s16, %s4425_s3 }
  0x45   : > { %p2971_p10 = pnand %p2969_p4, %p3665_p8 }
  0x47   : > { %p2972_p11 = pneg %p2971_p10 }
  0x49   : > { %p2977_p13 = pnand %p2975_p12, %p2972_p11 }
  0x4b   : > { %2980 = shalt.err (!%p2977_p13)
}
  0x4c   : > { %s2981_s26 = scalar_lea.vmem %s3653_s30, 16  ;;  %s2988_s21 = scalar_lea.vmem %s3653_s30, 32 }
  0x4d   : > { %p2982_p0 = scmp.ne.s32.totalorder %s3653_s30, %s2981_s26  ;;  %p2989_p7 = scmp.lt.s32.totalorder %s3653_s30, %s3653_s30 }
  0x4e   : > { %p2990_p9 = scmp.lt.s32.totalorder %s2988_s21, %s2981_s26 }
  0x4f   : > { %p2984_p2 = pnand %p2982_p0, %p3665_p8 }
  0x50   : > { %p2991_p4 = por %p2990_p9, %p2989_p7 }
  0x51   : > { %p2985_p5 = pneg %p2984_p2 }
  0x53   : > { %p2992_p10 = pnand %p2991_p4, %p2985_p5 }
  0x55   : > { %2995 = shalt.err (!%p2992_p10)
}
  0x56   : > { %2770 = dma.hbm_to_vmem [thread:$0]  (!%p3649_p6), %s4425_s3, 16, %s3653_s30, [#allocation9]  }
  0x57   : > { %s4426_s5 = sld [smem:[#allocation50_spill]] }
  0x5d   : > { %s2996_s20 = scalar_lea.hbm %s4426_s5, 16 }
  0x5e   : > { %p2997_p11 = scmp.ne.s32.totalorder %s4426_s5, %s2996_s20  ;;  %p3003_p0 = scmp.lt.u32.totalorder %s2996_s20, %s4426_s5 }
  0x60   : > { %p2999_p12 = pnand %p2997_p11, %p3665_p8 }
  0x62   : > { %p3000_p13 = pneg %p2999_p12 }
  0x64   : > { %p3005_p2 = pnand %p3003_p0, %p3000_p13 }
  0x66   : > { %3008 = shalt.err (!%p3005_p2)
}
  0x67   : > { %s3009_s30 = scalar_lea.vmem %s3655_s18, 16  ;;  %s3016_s21 = scalar_lea.vmem %s3655_s18, 32 }
  0x68   : > { %p3010_p5 = scmp.ne.s32.totalorder %s3655_s18, %s3009_s30  ;;  %p3017_p4 = scmp.lt.s32.totalorder %s3655_s18, %s3655_s18 }
  0x69   : > { %p3018_p10 = scmp.lt.s32.totalorder %s3016_s21, %s3009_s30 }
  0x6a   : > { %p3012_p7 = pnand %p3010_p5, %p3665_p8 }
  0x6b   : > { %p3019_p11 = por %p3018_p10, %p3017_p4 }
  0x6c   : > { %p3013_p9 = pneg %p3012_p7 }
  0x6e   : > { %p3020_p12 = pnand %p3019_p11, %p3013_p9 }
  0x70   : > { %3023 = shalt.err (!%p3020_p12)
}
  0x71   : > { %2776 = dma.hbm_to_vmem [thread:$0]  (!%p3649_p6), %s4426_s5, 16, %s3655_s18, [#allocation12]  }
  0x72   : > { %s3501_s27 = smov [#allocation14]   ;;  %s3502_s20 = smov [#allocation17]  }
  0x73   : > { %s493_s19 = sshll.u32 %s3501_s27, 4  ;;  %s515_s25 = sshll.u32 %s3502_s20, 4  ;;  %s494_s19 = int_to_ptr.vmem [resolvable:$true] %s493_s19  ;;  %s516_s25 = int_to_ptr.vmem [resolvable:$true] %s515_s25 }
  0x74   : > { %s4427_s7 = sld [smem:[#allocation52_spill]] }
  0x7a   : > { %s3024_s26 = scalar_lea.hbm %s4427_s7, 16 }
  0x7b   : > { %p3025_p13 = scmp.ne.s32.totalorder %s4427_s7, %s3024_s26  ;;  %p3031_p5 = scmp.lt.u32.totalorder %s3024_s26, %s4427_s7 }
  0x7d   : > { %p3027_p0 = pnand %p3025_p13, %p3665_p8 }
  0x7f   : > { %p3028_p2 = pneg %p3027_p0 }
  0x81   : > { %p3033_p7 = pnand %p3031_p5, %p3028_p2 }
  0x83   : > { %3036 = shalt.err (!%p3033_p7)
}
  0x84   : > { %s3037_s18 = scalar_lea.vmem %s494_s19, 16  ;;  %s3044_s23 = scalar_lea.vmem %s494_s19, 32 }
  0x85   : > { %p3038_p9 = scmp.ne.s32.totalorder %s494_s19, %s3037_s18  ;;  %p3045_p11 = scmp.lt.s32.totalorder %s494_s19, %s494_s19 }
  0x86   : > { %p3046_p12 = scmp.lt.s32.totalorder %s3044_s23, %s3037_s18 }
  0x87   : > { %p3040_p4 = pnand %p3038_p9, %p3665_p8 }
  0x88   : > { %p3047_p1 = por %p3046_p12, %p3045_p11 }
  0x89   : > { %p3041_p10 = pneg %p3040_p4 }
  0x8b   : > { %p3048_p3 = pnand %p3047_p1, %p3041_p10 }
  0x8d   : > { %3051 = shalt.err (!%p3048_p3)
}
  0x8e   : > { %2782 = dma.hbm_to_vmem [thread:$0]  (!%p3649_p6), %s4427_s7, 16, %s494_s19, [#allocation15]  }
  0x8f   : > { %s3052_s16 = scalar_lea.hbm %s4383_s9, 16 }
  0x90   : > { %p3053_p13 = scmp.ne.s32.totalorder %s4383_s9, %s3052_s16  ;;  %p3059_p3 = scmp.lt.u32.totalorder %s3052_s16, %s4383_s9 }
  0x92   : > { %p3055_p0 = pnand %p3053_p13, %p3665_p8 }
  0x94   : > { %p3056_p1 = pneg %p3055_p0 }
  0x96   : > { %p3061_p2 = pnand %p3059_p3, %p3056_p1 }
  0x98   : > { %3064 = shalt.err (!%p3061_p2)
}
  0x99   : > { %s3065_s18 = scalar_lea.vmem %s516_s25, 16  ;;  %s3072_s19 = scalar_lea.vmem %s516_s25, 32 }
  0x9a   : > { %p3066_p5 = scmp.ne.s32.totalorder %s516_s25, %s3065_s18  ;;  %p3073_p4 = scmp.lt.s32.totalorder %s516_s25, %s516_s25 }
  0x9b   : > { %p3074_p10 = scmp.lt.s32.totalorder %s3072_s19, %s3065_s18 }
  0x9c   : > { %p3068_p7 = pnand %p3066_p5, %p3665_p8 }
  0x9d   : > { %p3075_p11 = por %p3074_p10, %p3073_p4 }
  0x9e   : > { %p3069_p9 = pneg %p3068_p7 }
  0xa0   : > { %p3076_p12 = pnand %p3075_p11, %p3069_p9 }
  0xa2   : > { %3079 = shalt.err (!%p3076_p12)
}
  0xa3   : > { %2788 = dma.hbm_to_vmem [thread:$0]  (!%p3649_p6), %s4383_s9, 16, %s516_s25, [#allocation18]  }
  0xa4   : > { %s3503_s20 = smov [#allocation20]   ;;  %s3504_s17 = smov [#allocation23]  }
  0xa5   : > { %s539_s28 = sshll.u32 %s3503_s20, 4  ;;  %s563_s16 = sshll.u32 %s3504_s17, 4  ;;  %s540_s28 = int_to_ptr.vmem [resolvable:$true] %s539_s28  ;;  %s564_s16 = int_to_ptr.vmem [resolvable:$true] %s563_s16 }
  0xa6   : > { %s3080_s21 = scalar_lea.hbm %s4385_s11, 16 }
  0xa7   : > { %p3081_p13 = scmp.ne.s32.totalorder %s4385_s11, %s3080_s21  ;;  %p3087_p3 = scmp.lt.u32.totalorder %s3080_s21, %s4385_s11 }
  0xa9   : > { %p3083_p0 = pnand %p3081_p13, %p3665_p8 }
  0xab   : > { %p3084_p1 = pneg %p3083_p0 }
  0xad   : > { %p3089_p2 = pnand %p3087_p3, %p3084_p1 }
  0xaf   : > { %3092 = shalt.err (!%p3089_p2)
}
  0xb0   : > { %s3093_s25 = scalar_lea.vmem %s540_s28, 16  ;;  %s3100_s27 = scalar_lea.vmem %s540_s28, 32 }
  0xb1   : > { %p3094_p5 = scmp.ne.s32.totalorder %s540_s28, %s3093_s25  ;;  %p3101_p4 = scmp.lt.s32.totalorder %s540_s28, %s540_s28 }
  0xb2   : > { %p3102_p10 = scmp.lt.s32.totalorder %s3100_s27, %s3093_s25 }
  0xb3   : > { %p3096_p7 = pnand %p3094_p5, %p3665_p8 }
  0xb4   : > { %p3103_p11 = por %p3102_p10, %p3101_p4 }
  0xb5   : > { %p3097_p9 = pneg %p3096_p7 }
  0xb7   : > { %p3104_p12 = pnand %p3103_p11, %p3097_p9 }
  0xb9   : > { %3107 = shalt.err (!%p3104_p12)
}
  0xba   : > { %2794 = dma.hbm_to_vmem [thread:$0]  (!%p3649_p6), %s4385_s11, 16, %s540_s28, [#allocation21]  }
  0xbb   : > { %s3108_s21 = scalar_lea.hbm %s4387_s13, 16 }
  0xbc   : > { %p3109_p13 = scmp.ne.s32.totalorder %s4387_s13, %s3108_s21  ;;  %p3115_p3 = scmp.lt.u32.totalorder %s3108_s21, %s4387_s13 }
  0xbe   : > { %p3111_p0 = pnand %p3109_p13, %p3665_p8 }
  0xc0   : > { %p3112_p1 = pneg %p3111_p0 }
  0xc2   : > { %p3117_p2 = pnand %p3115_p3, %p3112_p1 }
  0xc4   : > { %3120 = shalt.err (!%p3117_p2)
}
  0xc5   : > { %s3121_s25 = scalar_lea.vmem %s564_s16, 16  ;;  %s3128_s28 = scalar_lea.vmem %s564_s16, 32 }
  0xc6   : > { %p3122_p5 = scmp.ne.s32.totalorder %s564_s16, %s3121_s25  ;;  %p3129_p4 = scmp.lt.s32.totalorder %s564_s16, %s564_s16 }
  0xc7   : > { %p3130_p10 = scmp.lt.s32.totalorder %s3128_s28, %s3121_s25 }
  0xc8   : > { %p3124_p7 = pnand %p3122_p5, %p3665_p8 }
  0xc9   : > { %p3131_p11 = por %p3130_p10, %p3129_p4 }
  0xca   : > { %p3125_p9 = pneg %p3124_p7 }
  0xcc   : > { %p3132_p12 = pnand %p3131_p11, %p3125_p9 }
  0xce   : > { %3135 = shalt.err (!%p3132_p12)
}
  0xcf   : > { %2800 = dma.hbm_to_vmem [thread:$0]  (!%p3649_p6), %s4387_s13, 16, %s564_s16, [#allocation24]  }
  0xd0   : > { %s3505_s17 = smov [#allocation10]   ;;  %s3506_s30 = smov [#allocation13]  }
  0xd1   : > { %s455_s26 = sshll.u32 %s3505_s17, 4  ;;  %s479_s21 = sshll.u32 %s3506_s30, 4  ;;  %s456_s26 = int_to_ptr.vmem [resolvable:$true] %s455_s26  ;;  %s480_s21 = int_to_ptr.vmem [resolvable:$true] %s479_s21 }
  0xd2   : > { %s4428_s4 = sld [smem:[#allocation49_spill]] }
  0xd8   : > { %s3136_s19 = scalar_lea.hbm %s4428_s4, 256 }
  0xd9   : > { %p3137_p13 = scmp.ne.s32.totalorder %s4428_s4, %s3136_s19  ;;  %p3143_p3 = scmp.lt.u32.totalorder %s3136_s19, %s4428_s4 }
  0xdb   : > { %p3139_p0 = pnand %p3137_p13, %p3665_p8 }
  0xdd   : > { %p3140_p1 = pneg %p3139_p0 }
  0xdf   : > { %p3145_p2 = pnand %p3143_p3, %p3140_p1 }
  0xe1   : > { %3148 = shalt.err (!%p3145_p2)
}
  0xe2   : > { %s3149_s16 = scalar_lea.vmem %s456_s26, 256  ;;  %p3157_p4 = scmp.lt.s32.totalorder %s456_s26, %s456_s26 }
  0xe3   : > { %p3150_p5 = scmp.ne.s32.totalorder %s456_s26, %s3149_s16  ;;  %p3158_p10 = scmp.lt.s32.totalorder %s3149_s16, %s3149_s16 }
  0xe5   : > { %p3152_p7 = pnand %p3150_p5, %p3665_p8  ;;  %p3159_p11 = por %p3158_p10, %p3157_p4 }
  0xe7   : > { %p3153_p9 = pneg %p3152_p7 }
  0xe9   : > { %p3160_p12 = pnand %p3159_p11, %p3153_p9 }
  0xeb   : > { %3163 = shalt.err (!%p3160_p12)
}
  0xec   : > { %s4429_s20 = smov 64   ;;  %s4430_s6 = sld [smem:[#allocation51_spill]] }
  0xed   : > { %2773 = dma.hbm_to_vmem [thread:$0]  (!%p3649_p6), %s4428_s4, 256, %s456_s26, [#allocation9], %s4429_s20, %s4429_s20, %s3500_s1  }
  0xf2   : > { %s3164_s19 = scalar_lea.hbm %s4430_s6, 256 }
  0xf3   : > { %p3165_p13 = scmp.ne.s32.totalorder %s4430_s6, %s3164_s19  ;;  %p3171_p3 = scmp.lt.u32.totalorder %s3164_s19, %s4430_s6 }
  0xf5   : > { %p3167_p0 = pnand %p3165_p13, %p3665_p8 }
  0xf7   : > { %p3168_p1 = pneg %p3167_p0 }
  0xf9   : > { %p3173_p2 = pnand %p3171_p3, %p3168_p1 }
  0xfb   : > { %3176 = shalt.err (!%p3173_p2)
}
  0xfc   : > { %s3177_s16 = scalar_lea.vmem %s480_s21, 256  ;;  %p3185_p4 = scmp.lt.s32.totalorder %s480_s21, %s480_s21 }
  0xfd   : > { %p3178_p5 = scmp.ne.s32.totalorder %s480_s21, %s3177_s16  ;;  %p3186_p10 = scmp.lt.s32.totalorder %s3177_s16, %s3177_s16 }
  0xff   : > { %p3180_p7 = pnand %p3178_p5, %p3665_p8  ;;  %p3187_p11 = por %p3186_p10, %p3185_p4 }
 0x101   : > { %p3181_p9 = pneg %p3180_p7 }
 0x103   : > { %p3188_p12 = pnand %p3187_p11, %p3181_p9 }
 0x105   : > { %3191 = shalt.err (!%p3188_p12)
}
 0x106   : > { %2779 = dma.hbm_to_vmem [thread:$0]  (!%p3649_p6), %s4430_s6, 256, %s480_s21, [#allocation12], %s4429_s20, %s4429_s20, %s3500_s1  }
 0x107   : > { %s3507_s30 = smov [#allocation16]   ;;  %s3508_s18 = smov [#allocation19]  }
 0x108   : > { %s504_s22 = sshll.u32 %s3507_s30, 4  ;;  %s525_s19 = sshll.u32 %s3508_s18, 4  ;;  %s505_s22 = int_to_ptr.vmem [resolvable:$true] %s504_s22  ;;  %s526_s19 = int_to_ptr.vmem [resolvable:$true] %s525_s19 }
 0x109   : > { %s4431_s8 = sld [smem:[#allocation53_spill]] }
 0x10f   : > { %s3192_s28 = scalar_lea.hbm %s4431_s8, 16 }
 0x110   : > { %p3193_p13 = scmp.ne.s32.totalorder %s4431_s8, %s3192_s28  ;;  %p3199_p3 = scmp.lt.u32.totalorder %s3192_s28, %s4431_s8 }
 0x112   : > { %p3195_p0 = pnand %p3193_p13, %p3665_p8 }
 0x114   : > { %p3196_p1 = pneg %p3195_p0 }
 0x116   : > { %p3201_p2 = pnand %p3199_p3, %p3196_p1 }
 0x118   : > { %3204 = shalt.err (!%p3201_p2)
}
 0x119   : > { %s3205_s21 = scalar_lea.vmem %s505_s22, 16  ;;  %s3212_s17 = scalar_lea.vmem %s505_s22, 32 }
 0x11a   : > { %p3206_p5 = scmp.ne.s32.totalorder %s505_s22, %s3205_s21  ;;  %p3213_p4 = scmp.lt.s32.totalorder %s505_s22, %s505_s22 }
 0x11b   : > { %p3214_p10 = scmp.lt.s32.totalorder %s3212_s17, %s3205_s21 }
 0x11c   : > { %p3208_p7 = pnand %p3206_p5, %p3665_p8 }
 0x11d   : > { %p3215_p11 = por %p3214_p10, %p3213_p4 }
 0x11e   : > { %p3209_p9 = pneg %p3208_p7 }
 0x120   : > { %p3216_p12 = pnand %p3215_p11, %p3209_p9 }
 0x122   : > { %3219 = shalt.err (!%p3216_p12)
}
 0x123   : > { %2785 = dma.hbm_to_vmem [thread:$0]  (!%p3649_p6), %s4431_s8, 16, %s505_s22, [#allocation15]  }
 0x124   : > { %s3220_s25 = scalar_lea.hbm %s4384_s10, 256 }
 0x125   : > { %p3221_p13 = scmp.ne.s32.totalorder %s4384_s10, %s3220_s25  ;;  %p3227_p3 = scmp.lt.u32.totalorder %s3220_s25, %s4384_s10 }
 0x127   : > { %p3223_p0 = pnand %p3221_p13, %p3665_p8 }
 0x129   : > { %p3224_p1 = pneg %p3223_p0 }
 0x12b   : > { %p3229_p2 = pnand %p3227_p3, %p3224_p1 }
 0x12d   : > { %3232 = shalt.err (!%p3229_p2)
}
 0x12e   : > { %s3233_s21 = scalar_lea.vmem %s526_s19, 256  ;;  %p3241_p4 = scmp.lt.s32.totalorder %s526_s19, %s526_s19 }
 0x12f   : > { %p3234_p5 = scmp.ne.s32.totalorder %s526_s19, %s3233_s21  ;;  %p3242_p10 = scmp.lt.s32.totalorder %s3233_s21, %s3233_s21 }
 0x131   : > { %p3236_p7 = pnand %p3234_p5, %p3665_p8  ;;  %p3243_p11 = por %p3242_p10, %p3241_p4 }
 0x133   : > { %p3237_p9 = pneg %p3236_p7 }
 0x135   : > { %p3244_p12 = pnand %p3243_p11, %p3237_p9 }
 0x137   : > { %3247 = shalt.err (!%p3244_p12)
}
 0x138   : > { %2791 = dma.hbm_to_vmem [thread:$0]  (!%p3649_p6), %s4384_s10, 256, %s526_s19, [#allocation18], %s4429_s20, %s4429_s20, %s3500_s1  }
 0x139   : > { %s3509_s30 = smov [#allocation22]   ;;  %s3510_s2 = smov [#allocation25]  }
 0x13a   : > { %s549_s18 = sshll.u32 %s3509_s30, 4  ;;  %s574_s23 = sshll.u32 %s3510_s2, 4  ;;  %s550_s18 = int_to_ptr.vmem [resolvable:$true] %s549_s18  ;;  %s575_s23 = int_to_ptr.vmem [resolvable:$true] %s574_s23 }
 0x13b   : > { %s3248_s27 = scalar_lea.hbm %s4386_s12, 512 }
 0x13c   : > { %p3249_p13 = scmp.ne.s32.totalorder %s4386_s12, %s3248_s27  ;;  %p3255_p3 = scmp.lt.u32.totalorder %s3248_s27, %s4386_s12 }
 0x13e   : > { %p3251_p0 = pnand %p3249_p13, %p3665_p8 }
 0x140   : > { %p3252_p1 = pneg %p3251_p0 }
 0x142   : > { %p3257_p2 = pnand %p3255_p3, %p3252_p1 }
 0x144   : > { %3260 = shalt.err (!%p3257_p2)
}
 0x145   : > { %s3261_s19 = scalar_lea.vmem %s550_s18, 512  ;;  %p3269_p4 = scmp.lt.s32.totalorder %s550_s18, %s550_s18 }
 0x146   : > { %p3262_p5 = scmp.ne.s32.totalorder %s550_s18, %s3261_s19  ;;  %p3270_p10 = scmp.lt.s32.totalorder %s3261_s19, %s3261_s19 }
 0x148   : > { %p3264_p7 = pnand %p3262_p5, %p3665_p8  ;;  %p3271_p11 = por %p3270_p10, %p3269_p4 }
 0x14a   : > { %p3265_p9 = pneg %p3264_p7 }
 0x14c   : > { %p3272_p12 = pnand %p3271_p11, %p3265_p9 }
 0x14e   : > { %3275 = shalt.err (!%p3272_p12)
}
 0x14f   : > { %2797 = dma.hbm_to_vmem [thread:$0]  (!%p3649_p6), %s4386_s12, 512, %s550_s18, [#allocation21], %s4429_s20, %s4429_s20, %s3500_s1  }
 0x150   : > { %s3276_s28 = scalar_lea.hbm %s4388_s14, 16 }
 0x151   : > { %p3277_p13 = scmp.ne.s32.totalorder %s4388_s14, %s3276_s28  ;;  %p3283_p3 = scmp.lt.u32.totalorder %s3276_s28, %s4388_s14 }
 0x153   : > { %p3279_p0 = pnand %p3277_p13, %p3665_p8 }
 0x155   : > { %p3280_p1 = pneg %p3279_p0 }
 0x157   : > { %p3285_p2 = pnand %p3283_p3, %p3280_p1 }
 0x159   : > { %3288 = shalt.err (!%p3285_p2)
}
 0x15a   : > { %s3289_s22 = scalar_lea.vmem %s575_s23, 16  ;;  %s3296_s1 = scalar_lea.vmem %s575_s23, 32 }
 0x15b   : > { %p3290_p5 = scmp.ne.s32.totalorder %s575_s23, %s3289_s22  ;;  %p3297_p4 = scmp.lt.s32.totalorder %s575_s23, %s575_s23 }
 0x15c   : > { %p3298_p10 = scmp.lt.s32.totalorder %s3296_s1, %s3289_s22 }
 0x15d   : > { %p3292_p7 = pnand %p3290_p5, %p3665_p8 }
 0x15e   : > { %p3299_p11 = por %p3298_p10, %p3297_p4 }
 0x15f   : > { %p3293_p9 = pneg %p3292_p7 }
 0x161   : > { %p3300_p12 = pnand %p3299_p11, %p3293_p9 }
 0x163   : > { %3303 = shalt.err (!%p3300_p12)
}
 0x164   : > { %2803 = dma.hbm_to_vmem [thread:$0]  (!%p3649_p6), %s4388_s14, 16, %s575_s23, [#allocation24]  }
 0x165   : > { %s3511_s19 = smov [#allocation26]   ;;  %s3304_s25 = scalar_lea.hbm %s4389_s15, 16 }
 0x166   : > { %s585_s17 = sshll.u32 %s3511_s19, 4  ;;  %p3305_p13 = scmp.ne.s32.totalorder %s4389_s15, %s3304_s25  ;;  %s586_s17 = int_to_ptr.vmem [resolvable:$true] %s585_s17 }
 0x167   : > { %p3311_p3 = scmp.lt.u32.totalorder %s3304_s25, %s4389_s15 }
 0x168   : > { %p3307_p0 = pnand %p3305_p13, %p3665_p8 }
 0x16a   : > { %p3308_p1 = pneg %p3307_p0 }
 0x16c   : > { %p3313_p2 = pnand %p3311_p3, %p3308_p1 }
 0x16e   : > { %3316 = shalt.err (!%p3313_p2)
}
 0x16f   : > { %s3317_s23 = scalar_lea.vmem %s586_s17, 16  ;;  %s3324_s21 = scalar_lea.vmem %s586_s17, 32 }
 0x170   : > { %p3318_p5 = scmp.ne.s32.totalorder %s586_s17, %s3317_s23  ;;  %p3325_p4 = scmp.lt.s32.totalorder %s586_s17, %s586_s17 }
 0x171   : > { %p3326_p10 = scmp.lt.s32.totalorder %s3324_s21, %s3317_s23 }
 0x172   : > { %p3320_p7 = pnand %p3318_p5, %p3665_p8 }
 0x173   : > { %p3327_p11 = por %p3326_p10, %p3325_p4 }
 0x174   : > { %p3321_p9 = pneg %p3320_p7 }
 0x176   : > { %p3328_p12 = pnand %p3327_p11, %p3321_p9 }
 0x178   : > { %3331 = shalt.err (!%p3328_p12)
}
 0x179   : > { %s4432_s20 = sld [smem:[#allocation42_spill]]  ;;  %s4433_s18 = sld [smem:[#allocation41_spill]] }
 0x17a   : > { %s4434_s29 = sld [smem:[#allocation40_spill]]  ;;  %s4435_s19 = sld [smem:[#allocation43_spill]] }
 0x17b   : > { %2806 = dma.hbm_to_vmem [thread:$0]  (!%p3649_p6), %s4389_s15, 16, %s586_s17, [#allocation27]  }
 0x17c   : > { %s2498_s30 = sadd.s32 4294967294, %s3494_s24   ;;  %s3949_s0 = sadd.s32 1, %s3494_s24  }
 0x17d   : > { %s46_s2 = ssub.s32 %s3494_s24, %s3949_s0  ;;  %p57_p0 = scmp.eq.s32.totalorder %s3494_s24, 0 }
 0x17e   : > { %p47_p8 = scmp.eq.s32.totalorder %s46_s2, 0  ;;  %p412_p7 = scmp.eq.s32.totalorder %s2498_s30, 1 }
 0x17f   : > { %s49_s25 = sadd.s32 1, %s4432_s20  ;;  %p56_p13 = scmp.ne.s32.totalorder %s4432_s20, %s4433_s18 }
 0x180   : > { %p62_p1 = scmp.ne.s32.totalorder %s4433_s18, %s4434_s29  ;;  %p4437_p2 = scmp.eq.s32.totalorder %s4435_s19, 0 }
 0x181   : > { %s3960_s28 = scalar_select %p47_p8, %s4432_s20, %s49_s25  }
 0x182   : > { %p3962_p3 = por %p57_p0, %p56_p13  ;;  %p3968_p6 = por %p4437_p2, %p62_p1 }
 0x183   : > { %p406_p5 = scmp.eq.s32.totalorder %s4435_s19, 1  ;;  %p2832_p9 = scmp.lt.s32.totalorder %s3494_s24, 2 }
 0x184   : > { %s4438_s17 = scalar_select %p3968_p6, 1, 0 }
 0x185   : > { %s596_s16 = sand.u32 1, %s4432_s20   ;;  %p3975_p4 = por %p406_p5, %p56_p13 }
 0x186   : > { %p3979_p10 = por %p412_p7, %p62_p1  ;;  %s3983_s21 = sshll.u32 %s596_s16, 3 }
 0x187   : > { %s4439_s26 = scalar_select %p3975_p4, 1, 0 }
 0x188   : > { %s4440_s23 = scalar_select %p3979_p10, 1, 0 }
 0x189   : > { %s2516_s22 = sshll.u32 %s3494_s24, 7  ;;  %s4441_s29 = sld [smem:[#allocation45_spill]] }
 0x18a   : > { %s600_s20 = scalar_lea.vmem [#allocation2], %s3983_s21  ;;  %p3996_p11 = pnand %p2832_p9, %p3962_p3 }
 0x18b   : > { %s607_s19 = sshll.u32 %s600_s20, 4  ;;  %s4443_s4 = sld [smem:[#allocation46_spill]]  ;;  %s3992_s19 = int_to_ptr.vmem [resolvable:$true] %s607_s19 }
 0x18c   : > { %s614_s18 = sand.u32 1, %s3494_s24   ;;  %s597_s5 = scalar_lea.sflag [#allocation3], %s596_s16 }
 0x18d   : > { %p3334_p8 = pneg %p3996_p11 }
 0x18f   : > { %s3989_s2 = scalar_lea.hbm %s4441_s29, %s2516_s22  ;;  %s3337_s7 = scalar_lea.hbm %s4441_s29, 256 }
 0x190   : > { %s3332_s6 = scalar_lea.hbm %s3989_s2, 128  ;;  %p3338_p1 = scmp.lt.u32.totalorder %s3989_s2, %s4441_s29 }
 0x191   : > { %s4003_s1 = scalar_lea.hbm %s4443_s4, %s2516_s22  ;;  %p3333_p12 = scmp.ne.s32.totalorder %s3989_s2, %s3332_s6 }
 0x192   : > { %p3339_p3 = scmp.lt.u32.totalorder %s3337_s7, %s3332_s6  ;;  %p3341_p5 = scmp.lt.u32.totalorder %s3332_s6, %s3989_s2 }
 0x193   : > { %p3335_p13 = pnand %p3334_p8, %p3333_p12 }
 0x194   : > { %p3340_p2 = por %p3339_p3, %p3338_p1 }
 0x195   : > { %p3336_p0 = pneg %p3335_p13 }
 0x196   : > { %p3342_p7 = por %p3341_p5, %p3340_p2 }
 0x198   : > { %p3343_p9 = pnand %p3342_p7, %p3336_p0 }
 0x19a   : > { %3346 = shalt.err (!%p3343_p9)
}
 0x19b   : > { %s3347_s16 = scalar_lea.vmem %s3992_s19, 128  ;;  %s3512_s22 = smov [#allocation2]  }
 0x19c   : > { %p3348_p12 = scmp.ne.s32.totalorder %s3992_s19, %s3347_s16  ;;  %s3352_s25 = sshll.u32 %s3512_s22, 4  ;;  %s3353_s25 = int_to_ptr.vmem [resolvable:$false] %s3352_s25 }
 0x19d   : > { %s3354_s8 = scalar_lea.vmem %s3353_s25, 256  ;;  %p3355_p4 = scmp.lt.s32.totalorder %s3992_s19, %s3353_s25 }
 0x19e   : > { %p3350_p13 = pnand %p3348_p12, %p3334_p8  ;;  %p3356_p1 = scmp.lt.s32.totalorder %s3354_s8, %s3347_s16 }
 0x1a0   : > { %p3351_p10 = pneg %p3350_p13  ;;  %p3357_p3 = por %p3356_p1, %p3355_p4 }
 0x1a2   : > { %p3358_p2 = pnand %p3357_p3, %p3351_p10 }
 0x1a4   : > { %3361 = shalt.err (!%p3358_p2)
}
 0x1a5   : > { %2810 = dma.hbm_to_vmem [thread:$0]  (!%p3996_p11), %s3989_s2, 128, %s3992_s19, %s597_s5  }
 0x1a6   : > { %s618_s6 = scalar_lea.vmem [#allocation5], %s3983_s21  ;;  %s615_s27 = scalar_lea.sflag [#allocation6], %s614_s18 }
 0x1a7   : > { %s625_s7 = sshll.u32 %s618_s6, 4  ;;  %s3362_s20 = scalar_lea.hbm %s4003_s1, 128  ;;  %s626_s7 = int_to_ptr.vmem [resolvable:$true] %s625_s7 }
 0x1a8   : > { %p3363_p4 = scmp.ne.s32.totalorder %s4003_s1, %s3362_s20  ;;  %s3367_s22 = scalar_lea.hbm %s4443_s4, 256 }
 0x1a9   : > { %p3368_p5 = scmp.lt.u32.totalorder %s4003_s1, %s4443_s4  ;;  %p3369_p7 = scmp.lt.u32.totalorder %s3367_s22, %s3362_s20 }
 0x1aa   : > { %p3365_p10 = pnand %p3363_p4, %p3334_p8  ;;  %p3371_p12 = scmp.lt.u32.totalorder %s3362_s20, %s4003_s1 }
 0x1ab   : > { %p3370_p9 = por %p3369_p7, %p3368_p5 }
 0x1ac   : > { %p3366_p0 = pneg %p3365_p10 }
 0x1ad   : > { %p3372_p13 = por %p3371_p12, %p3370_p9 }
 0x1af   : > { %p3373_p1 = pnand %p3372_p13, %p3366_p0 }
 0x1b1   : > { %3376 = shalt.err (!%p3373_p1)
}
 0x1b2   : > { %s3377_s5 = scalar_lea.vmem %s626_s7, 128  ;;  %s3513_s21 = smov [#allocation5]  }
 0x1b3   : > { %p3378_p3 = scmp.ne.s32.totalorder %s626_s7, %s3377_s5  ;;  %s3382_s2 = sshll.u32 %s3513_s21, 4  ;;  %s3383_s2 = int_to_ptr.vmem [resolvable:$false] %s3382_s2 }
 0x1b4   : > { %s3384_s19 = scalar_lea.vmem %s3383_s2, 256  ;;  %p3385_p10 = scmp.lt.s32.totalorder %s626_s7, %s3383_s2 }
 0x1b5   : > { %p3380_p2 = pnand %p3378_p3, %p3334_p8  ;;  %p3386_p6 = scmp.lt.s32.totalorder %s3384_s19, %s3377_s5 }
 0x1b7   : > { %p3381_p4 = pneg %p3380_p2  ;;  %p3387_p5 = por %p3386_p6, %p3385_p10 }
 0x1b9   : > { %p3388_p7 = pnand %p3387_p5, %p3381_p4 }
 0x1bb   : > { %3391 = shalt.err (!%p3388_p7)
}
 0x1bc   : > { %2813 = dma.hbm_to_vmem [thread:$0]  (!%p3996_p11), %s4003_s1, 128, %s626_s7, %s615_s27  }
 0x1bd   : > { %s4444_s18 = sld [smem:[#allocation44_spill]] }
 0x1c3   : > { %p4445_p0 = scmp.ne.s32.totalorder %s4444_s18, 0 }
 0x1c4   : > { %s4446_s6 = sld [smem:[#allocation41_spill]] (!%p4445_p0)  ;;  %p4447_p6 = scmp.ne.s32.totalorder (!%p4445_p0), %s4438_s17, 0 }
 0x1c5   : > { %634 = sbr.rel (%p4445_p0) target bundleno = 3214 (0xc8e), region = 84 }
 0x1ca   : > { %s4056_s20 = sand.u32 (!%p4445_p0), 1, %s4446_s6  }
 0x1cb   : > { %s4059_s3 = sshll.u32 (!%p4445_p0), %s4056_s20, 3  ;;  %s637_s16 = scalar_lea.sflag (!%p4445_p0), [#allocation3], %s4056_s20 }
 0x1cc   : > { %s640_s22 = scalar_lea.vmem [#allocation2], %s4059_s3 }
 0x1cd   : > { %3437 = dma.done.wait (%p4447_p6), %s637_s16, 128  }
 0x1ce   : > { %3439 = vsyncadd (%p4447_p6), %s637_s16, 4294967168  ;;  %s4448_s30 = sld [smem:[#allocation43_spill]]  ;;  %s649_s27 = scalar_lea.vmem [#allocation5], %s4059_s3 }
 0x1d4   : > { %s645_s1 = sand.u32 1, %s4448_s30  }
 0x1d5   : > { %s646_s7 = scalar_lea.sflag [#allocation6], %s645_s1 }
 0x1d6   : > { %3441 = dma.done.wait (%p4447_p6), %s646_s7, 128  }
 0x1d7   : > { %3443 = vsyncadd (%p4447_p6), %s646_s7, 4294967168  ;;  %p4449_p11 = scmp.eq.s32.totalorder %s4448_s30, 0 }
 0x1d9   : > { %3445 = dma.done.wait (%p4449_p11), [#allocation6], 256   ;;  %p4450_p8 = pmov %p4449_p11 }
 0x1db   : > { %3447 = vsyncadd (%p4450_p8), [#allocation6], 4294967040  ;;  %p4451_p9 = pmov %p4450_p8 }
 0x1dc   : > { %p4452_p12 = pmov %p4450_p8 }
 0x1dd   : > { %3449 = dma.done.wait (%p4451_p9), [#allocation9], 272  }
 0x1de   : > { %3451 = vsyncadd (%p4452_p12), [#allocation9], 4294967024  ;;  %p4453_p13 = pmov %p4450_p8 }
 0x1df   : > { %p4454_p1 = pmov %p4450_p8 }
 0x1e0   : > { %3453 = dma.done.wait (%p4453_p13), [#allocation12], 272  }
 0x1e1   : > { %3455 = vsyncadd (%p4454_p1), [#allocation12], 4294967024  ;;  %p4455_p3 = pmov %p4454_p1 }
 0x1e2   : > { %p4456_p2 = pmov %p4454_p1 }
 0x1e3   : > { %3457 = dma.done.wait (%p4455_p3), [#allocation15], 32  }
 0x1e4   : > { %3459 = vsyncadd (%p4456_p2), [#allocation15], 4294967264  ;;  %p4457_p4 = pmov %p4454_p1 }
 0x1e5   : > { %p4458_p10 = pmov %p4454_p1 }
 0x1e6   : > { %3461 = dma.done.wait (%p4457_p4), [#allocation18], 272  }
 0x1e7   : > { %3463 = vsyncadd (%p4458_p10), [#allocation18], 4294967024  ;;  %p4459_p5 = pmov %p4454_p1 }
 0x1e8   : > { %p4460_p7 = pmov %p4454_p1 }
 0x1e9   : > { %3465 = dma.done.wait (%p4459_p5), [#allocation21], 528  }
 0x1ea   : > { %3467 = vsyncadd (%p4460_p7), [#allocation21], 4294966768  ;;  %p4461_p0 = pmov %p4454_p1 }
 0x1ec   : > { %3469 = dma.done.wait (%p4461_p0), [#allocation24], 32   ;;  %p4462_p6 = pmov %p4461_p0 }
 0x1ed   : > { %p4463_p11 = pmov %p4461_p0 }
 0x1ee   : > { %3471 = vsyncadd (%p4462_p6), [#allocation24], 4294967264 }
 0x1ef   : > { %3473 = dma.done.wait (%p4463_p11), [#allocation27], 16   ;;  %p4464_p8 = pmov %p4461_p0 }
 0x1f0   : > { %v3514_v0 = vmov 0.0   ;;  %vm3515_vm0 = vmmov 0   ;;  %v2908_v1 = vld [vmem:[#allocation7] sm:$0xff]   ;;  %v2909_v2 = vld [vmem:[#allocation7 + $0x8] sm:$0xff]   ;;  %v761_v4 = vld [vmem:[%s649_s27] sm:$0xff]  ;;  %vm788_vm1 = vcmask 261120   ;;  %v909_v16 = vlaneseq }
 0x1f1   : > { %3475 = vsyncadd (%p4464_p8), [#allocation27], 4294967280  ;;  %2610 = vmatprep.subr.bf16.mxu1 %v3514_v0  ;;  %2614 = vmatprep.mubr.msk.bf16.mxu1 %vm3515_vm0, %v3514_v0  ;;  %v4113_v3 = vld [vmem:[%s640_s22] sm:$0xff]  ;;  %v2537_v7 = vld [vmem:[#allocation8] ss:$0 sm:$0xff]  ;;  %s3516_s17 = smov 104  }
 0x1f2   : > { %2626 = vmatprep.subr.bf16.mxu0 %v3514_v0  ;;  %2628 = vmatprep.mubr.msk.bf16.mxu0 %vm3515_vm0, %v3514_v0  ;;  %v762_v5 = vadd.f32 %v761_v4, %v4113_v3  ;;  %s3517_s25 = smov 120   ;;  %s3518_s8 = smov 96   ;;  %v3520_v14 = vmov 1983009808   ;;  %v3521_v17 = vmov 1934713408   ;;  %v764_v41 = vpack.c.bf16 %v4113_v3, %v4113_v3 }
 0x1f3   : > { %2611 = vmatpush3.bf16.msra.mxu1 %v2908_v1  ;;  %s3519_s5 = smov 112   ;;  %v907_v15 = vunpack.c.l.s4 %v3520_v14  ;;  %v924_v18 = vunpack.c.l.s4 %v3521_v17  ;;  %v910_v20 = vshrl.u32 %v909_v16, 7  ;;  %v2910_v30 = vld [vmem:[#allocation10] sm:$0xff]   ;;  %v2911_v35 = vld [vmem:[#allocation10 + $0x8] sm:$0xff]   ;;  %v3522_v39 = vmov 0   ;;  %s3523_s21 = smov 16  }
 0x1f4   : > { %2612 = vmatprep.subr.bf16.mxu1 %v3514_v0  ;;  %v763_v6 = vpack.c.bf16 %v762_v5, %v762_v5  ;;  %vm1406_vm2 = vcmask 64512   ;;  %vm1642_vm3 = vcmask 1043456   ;;  %s3524_s2 = smov 8   ;;  %s3525_s19 = smov 24   ;;  %vm1973_vm4 = vcmask 130048  }
 0x1f5   : > { %v908_v19 = vunpack.c.0.s8 %v907_v15  ;;  %v925_v21 = vunpack.c.0.s8 %v924_v18  ;;  %vm1975_vm5 = vcmask 195584   ;;  %vm2183_vm6 = vcmask 523264   ;;  %s2574_s18 = sshll.u32 %s4448_s30, 7  ;;  %s758_s6 = scalar_lea.vmem [#allocation28], %s4059_s3 }
 0x1f6   : > { %s2272_s16 = sshll.u32 %s758_s6, 4  ;;  %s4465_s7 = sld [smem:[#allocation54_spill]]  ;;  %s4331_s16 = int_to_ptr.vmem [resolvable:$true] %s2272_s16 }
 0x1f7   : > { %2613 = vmatpush3.bf16.msra.mxu1 %v2909_v2  ;;  %v4124_v22 = vsub.s32 %v908_v19, %v910_v20  ;;  %v4127_v26 = vsub.s32 %v925_v21, %v910_v20  ;;  %p4466_p12 = scmp.ne.s32.totalorder %s4439_s26, 0  ;;  %s3526_s3 = smov [#allocation28]  }
 0x1f8   : > { %2618 = vmatprep.subr.bf16.mxu1 %v3514_v0  ;;  %s3396_s30 = sshll.u32 %s3526_s3, 4  ;;  %s3397_s30 = int_to_ptr.vmem [resolvable:$false] %s3396_s30 }
 0x1f9   : > { %p3399_p3 = scmp.lt.s32.totalorder %s4331_s16, %s3397_s30 }
 0x1fa   : > { %2615 = vmatmul.mubr.msk.bf16.vlgmr.msra.gmra.mrb[0].mxu1 %vm788_vm1, %v763_v6 }
 0x1fb   : > { %2622 = vmatprep.mubr.msk.bf16.mxu1 %vm3515_vm0, %v3514_v0  ;;  %2619 = vmatpush3.bf16.msra.mxu1 %v2910_v30 }
 0x1fc   : > { %2620 = vmatprep.subr.bf16.mxu1 %v3514_v0  ;;  %s4329_s27 = scalar_lea.hbm %s4465_s7, %s2574_s18 }
 0x1ff   : > { %2621 = vmatpush3.bf16.msra.mxu1 %v2911_v35 }
 0x200   : > { %2632 = vmatprep.subr.bf16.mxu1 %v3514_v0 }
 0x202   : > { %2623 = vmatmul.mubr.msk.bf16.vlgmr.msra.gmra.mrb[4].mxu1 %vm788_vm1, %v764_v41 }
 0x203   : > { %2634 = vmatprep.mubr.msk.bf16.mxu1 %vm3515_vm0, %v3514_v0 }
 0x2cd   : > { %v826_v8 = vpop.f32.mrb[0].mxu1 }
 0x2ce   : > { %v827_v9 = vadd.f32 %v2537_v7, %v826_v8  ;;  %v2616_v10 = vpop.f32.mrb[1].mxu1 }
 0x2cf   : > { %v829_v11 = vpop.f32.mrb[2].mxu1 }
 0x2d0   : > { %v898_v12 = vpack.c.bf16 %v827_v9, %v827_v9  ;;  %v2617_v13 = vpop.f32.mrb[3].mxu1 }
 0x2d2   : > { %904 = vrot.lane.b32.xlu1 %v898_v12, %s3516_s17  ;;  %900 = vrot.lane.b32.xlu0 %v898_v12, %s3517_s25  ;;  %v912_v34 = vrot.slane %v898_v12, %v4124_v22 }
 0x2d6   : > { %1067 = vrot.lane.b32.xlu1 %v898_v12, %s3518_s8  ;;  %902 = vrot.lane.b32.xlu0 %v898_v12, %s3519_s5 }
 0x344   : > { %v905_v23 = vpop.permute.xlu1 %904  ;;  %v901_v24 = vpop.permute.xlu0 %900 }
 0x345   : > { %v954_v25 = vrot.slane %v905_v23, %v4124_v22  ;;  %v946_v27 = vrot.slane %v901_v24, %v4124_v22  ;;  %1069 = vrot.lane.b32.xlu0 %v901_v24, %s3518_s8 }
 0x347   : > { %v955_v28 = vcombine.low %v946_v27, %v954_v25  ;;  %v956_v29 = vcombine.high %v946_v27, %v954_v25 }
 0x348   : > { %v903_v31 = vpop.permute.xlu0 %902  ;;  %v1068_v25 = vpop.permute.xlu1 %1067 }
 0x349   : > { %v963_v32 = vrot.slane %v955_v28, %v4127_v26  ;;  %v920_v33 = vrot.slane %v903_v31, %v4124_v22  ;;  %1073 = vrot.lane.b32.xlu0 %v905_v23, %s3518_s8  ;;  %1071 = vrot.lane.b32.xlu1 %v903_v31, %s3518_s8  ;;  %v970_v36 = vrot.slane %v956_v29, %v4127_v26  ;;  %s3398_s8 = scalar_lea.vmem %s3397_s30, 256 }
 0x34a   : > { %v1082_v31 = vrot.slane %v1068_v25, %v4124_v22 }
 0x34b   : > { %v921_v37 = vcombine.low %v912_v34, %v920_v33  ;;  %v922_v38 = vcombine.high %v912_v34, %v920_v33  ;;  %v971_v40 = vcombine.high %v963_v32, %v3522_v39  ;;  %v972_v44 = vcombine.high %v970_v36, %v3522_v39 }
 0x34c   : > { %v978_v45 = vshrl.u32 %v963_v32, 16  ;;  %v994_v51 = vshrl.u32 %v970_v36, 16 }
 0x34d   : > { %v929_v42 = vrot.slane %v921_v37, %v4127_v26  ;;  %v936_v43 = vrot.slane %v922_v38, %v4127_v26  ;;  %v986_v50 = vshrl.u32 %v971_v40, 16  ;;  %v1002_v58 = vshrl.u32 %v972_v44, 16 }
 0x34f   : > { %v937_v46 = vcombine.high %v929_v42, %v3522_v39  ;;  %v938_v47 = vcombine.high %v936_v43, %v3522_v39  ;;  %v975_v48 = vpack.i.b16 %v963_v32, %v929_v42  ;;  %v977_v49 = vshrl.u32 %v929_v42, 16 }
 0x350   : > { %v991_v52 = vpack.i.b16 %v970_v36, %v936_v43  ;;  %v993_v53 = vshrl.u32 %v936_v43, 16 }
 0x351   : > { %v979_v54 = vpack.i.b16 %v978_v45, %v977_v49  ;;  %v983_v55 = vpack.i.b16 %v971_v40, %v937_v46  ;;  %v985_v56 = vshrl.u32 %v937_v46, 16  ;;  %v999_v57 = vpack.i.b16 %v972_v44, %v938_v47 }
 0x352   : > { %v995_v59 = vpack.i.b16 %v994_v51, %v993_v53  ;;  %v1001_v60 = vshrl.u32 %v938_v47, 16  ;;  %v1005_v61 = vcombine.low %v975_v48, %v991_v52 }
 0x353   : > { %v987_v62 = vpack.i.b16 %v986_v50, %v985_v56  ;;  %v1013_v63 = vcombine.low %v983_v55, %v999_v57 }
 0x354   : > { %v1003_v1 = vpack.i.b16 %v1002_v58, %v1001_v60  ;;  %v1030_v2 = vcombine.low %v979_v54, %v995_v59  ;;  %v1012_v4 = vrot.slane %v1005_v61, %v4124_v22 }
 0x355   : > { %v1020_v5 = vrot.slane %v1013_v63, %v4124_v22 }
 0x356   : > { %v1038_v6 = vcombine.low %v987_v62, %v1003_v1  ;;  %v1037_v8 = vrot.slane %v1030_v2, %v4124_v22 }
 0x357   : > { %v1021_v7 = vcombine.low %v1012_v4, %v1020_v5 }
 0x358   : > { %v1045_v9 = vrot.slane %v1038_v6, %v4124_v22 }
 0x359   : > { %v4152_v10 = vrot.slane %v1021_v7, %v4127_v26 }
 0x35a   : > { %v1046_v11 = vcombine.low %v1037_v8, %v1045_v9 }
 0x35b   : > { %v4159_v13 = vcombine.high %v4152_v10, %v3522_v39  ;;  %v1058_v15 = vshrl.u32 %v4152_v10, 16 }
 0x35c   : > { %v4155_v12 = vrot.slane %v1046_v11, %v4127_v26 }
 0x35d   : > { %v1064_v20 = vshrl.u32 %v4159_v13, 16 }
 0x35e   : > { %v1057_v14 = vpack.i.b16 %v4155_v12, %v4152_v10  ;;  %v1059_v16 = vshrl.u32 %v4155_v12, 16  ;;  %v4167_v17 = vcombine.high %v4155_v12, %v3522_v39  ;;  %v892_v10 = vpop.f32.mrb[4].mxu1 }
 0x35f   : > { %v2624_v12 = vpop.f32.mrb[5].mxu1 }
 0x360   : > { %v4169_v18 = vpack.i.b16 %v1059_v16, %v1058_v15  ;;  %v1063_v19 = vpack.i.b16 %v4167_v17, %v4159_v13  ;;  %v1065_v21 = vshrl.u32 %v4167_v17, 16 }
 0x362   : > { %v4175_v23 = vpack.i.b16 %v1065_v21, %v1064_v20 }
 0x3b7   : > { %v1070_v24 = vpop.permute.xlu0 %1069 }
 0x3b8   : > { %v1116_v28 = vrot.slane %v1070_v24, %v4124_v22 }
 0x3bb   : > { %v1074_v27 = vpop.permute.xlu0 %1073  ;;  %v1072_v29 = vpop.permute.xlu1 %1071 }
 0x3bc   : > { %v1124_v30 = vrot.slane %v1074_v27, %v4124_v22  ;;  %v1090_v32 = vrot.slane %v1072_v29, %v4124_v22 }
 0x3be   : > { %v1125_v33 = vcombine.low %v1116_v28, %v1124_v30  ;;  %v1126_v34 = vcombine.high %v1116_v28, %v1124_v30  ;;  %v1091_v35 = vcombine.low %v1082_v31, %v1090_v32  ;;  %v1092_v36 = vcombine.high %v1082_v31, %v1090_v32 }
 0x3c0   : > { %v1133_v37 = vrot.slane %v1125_v33, %v4127_v26  ;;  %v1140_v38 = vrot.slane %v1126_v34, %v4127_v26  ;;  %v1099_v40 = vrot.slane %v1091_v35, %v4127_v26  ;;  %v1106_v41 = vrot.slane %v1092_v36, %v4127_v26 }
 0x3c2   : > { %v1141_v42 = vcombine.high %v1133_v37, %v3522_v39  ;;  %v1142_v43 = vcombine.high %v1140_v38, %v3522_v39  ;;  %v1148_v44 = vshrl.u32 %v1133_v37, 16  ;;  %v1164_v45 = vshrl.u32 %v1140_v38, 16 }
 0x3c3   : > { %v1107_v46 = vcombine.high %v1099_v40, %v3522_v39  ;;  %v1108_v47 = vcombine.high %v1106_v41, %v3522_v39  ;;  %v1147_v48 = vshrl.u32 %v1099_v40, 16  ;;  %v1163_v49 = vshrl.u32 %v1106_v41, 16 }
 0x3c4   : > { %v1145_v50 = vpack.i.b16 %v1133_v37, %v1099_v40  ;;  %v1156_v51 = vshrl.u32 %v1141_v42, 16  ;;  %v1161_v52 = vpack.i.b16 %v1140_v38, %v1106_v41  ;;  %v1172_v53 = vshrl.u32 %v1142_v43, 16 }
 0x3c5   : > { %v1155_v54 = vshrl.u32 %v1107_v46, 16  ;;  %v1171_v55 = vshrl.u32 %v1108_v47, 16  ;;  %v1149_v56 = vpack.i.b16 %v1148_v44, %v1147_v48  ;;  %v1153_v57 = vpack.i.b16 %v1141_v42, %v1107_v46 }
 0x3c6   : > { %v1165_v58 = vpack.i.b16 %v1164_v45, %v1163_v49  ;;  %v1169_v59 = vpack.i.b16 %v1142_v43, %v1108_v47  ;;  %v1175_v60 = vcombine.low %v1145_v50, %v1161_v52 }
 0x3c7   : > { %v1157_v61 = vpack.i.b16 %v1156_v51, %v1155_v54  ;;  %v1173_v62 = vpack.i.b16 %v1172_v53, %v1171_v55  ;;  %v2541_v53 = vld [vmem:[#allocation11] ss:$0 sm:$0xff] }
 0x3c8   : > { %v1183_v63 = vcombine.low %v1153_v57, %v1169_v59  ;;  %v1200_v1 = vcombine.low %v1149_v56, %v1165_v58  ;;  %v1182_v4 = vrot.slane %v1175_v60, %v4124_v22  ;;  %v893_v54 = vadd.f32 %v2541_v53, %v892_v10 }
 0x3c9   : > { %v1208_v2 = vcombine.low %v1157_v61, %v1173_v62 }
 0x3ca   : > { %v1190_v5 = vrot.slane %v1183_v63, %v4124_v22  ;;  %v1207_v6 = vrot.slane %v1200_v1, %v4124_v22  ;;  %v1237_v55 = vpack.c.bf16 %v893_v54, %v893_v54 }
 0x3cb   : > { %v1215_v7 = vrot.slane %v1208_v2, %v4124_v22 }
 0x3cc   : > { %v1191_v8 = vcombine.low %v1182_v4, %v1190_v5 }
 0x3cd   : > { %v1216_v9 = vcombine.low %v1207_v6, %v1215_v7 }
 0x3ce   : > { %v1198_v11 = vrot.slane %v1191_v8, %v4127_v26 }
 0x3cf   : > { %v1223_v15 = vrot.slane %v1216_v9, %v4127_v26 }
 0x3d0   : > { %v1228_v20 = vshrl.u32 %v1198_v11, 16  ;;  %v1199_v28 = vcombine.high %v1198_v11, %v3522_v39 }
 0x3d1   : > { %v1227_v16 = vpack.i.b16 %v1223_v15, %v1198_v11  ;;  %v1229_v21 = vshrl.u32 %v1223_v15, 16  ;;  %v1224_v24 = vcombine.high %v1223_v15, %v3522_v39 }
 0x3d2   : > { %v1234_v32 = vshrl.u32 %v1199_v28, 16 }
 0x3d3   : > { %v1411_v25 = vsel %vm1406_vm2, %v1227_v16, 0  ;;  %v1230_v27 = vpack.i.b16 %v1229_v21, %v1228_v20  ;;  %v1235_v30 = vshrl.u32 %v1224_v24, 16  ;;  %v1233_v31 = vpack.i.b16 %v1224_v24, %v1199_v28 }
 0x3d4   : > { %2627 = vmatpush3.bf16.xpose.msra.mxu0 %v1411_v25  ;;  %v1251_v25 = vrot.slane %v1237_v55, %v4124_v22 }
 0x3d5   : > { %v1457_v29 = vsel %vm1406_vm2, %v1230_v27, 0  ;;  %2638 = vmatprep.subr.bf16.mxu0 %v3514_v0  ;;  %v1236_v33 = vpack.i.b16 %v1235_v30, %v1234_v32  ;;  %v1503_v34 = vsel %vm1406_vm2, %v1233_v31, 0 }
 0x3d6   : > { %2633 = vmatpush3.bf16.xpose.msra.mxu1 %v1457_v29 }
 0x3d7   : > { %2644 = vmatprep.subr.bf16.mxu1 %v3514_v0  ;;  %v1549_v35 = vsel %vm1406_vm2, %v1236_v33, 0 }
 0x3db   : > { %2629 = vmatmul.mubr.msk.bf16.vlgmr.msra.gmra.mrb[0].mxu0 %vm1406_vm2, %v1057_v14  ;;  %v895_v14 = vpop.f32.mrb[6].mxu1 }
 0x3dc   : > { %2639 = vmatpush3.bf16.xpose.msra.mxu0 %v1503_v34  ;;  %2640 = vmatprep.mubr.msk.bf16.mxu0 %vm3515_vm0, %v3514_v0 }
 0x3dd   : > { %2635 = vmatmul.mubr.msk.bf16.vlgmr.msra.gmra.mrb[8].mxu1 %vm1406_vm2, %v4169_v18  ;;  %2650 = vmatprep.subr.bf16.mxu0 %v3514_v0  ;;  %v2625_v18 = vpop.f32.mrb[7].mxu1 }
 0x3de   : > { %2645 = vmatpush3.bf16.xpose.msra.mxu1 %v1549_v35  ;;  %2646 = vmatprep.mubr.msk.bf16.mxu1 %vm3515_vm0, %v3514_v0 }
 0x3df   : > { %2656 = vmatprep.subr.bf16.mxu1 %v3514_v0 }
 0x3e3   : > { %2641 = vmatmul.mubr.msk.bf16.vlgmr.msra.gmra.mrb[4].mxu0 %vm1406_vm2, %v1063_v19 }
 0x3e4   : > { %2652 = vmatprep.mubr.msk.bf16.mxu0 %vm3515_vm0, %v3514_v0 }
 0x3e5   : > { %2647 = vmatmul.mubr.msk.bf16.vlgmr.msra.gmra.mrb[12].mxu1 %vm1406_vm2, %v4175_v23 }
 0x3e6   : > { %2658 = vmatprep.mubr.msk.bf16.mxu1 %vm3515_vm0, %v3514_v0 }
 0x4ae   : > { %v1447_v36 = vpop.f32.mrb[0].mxu0 }
 0x4af   : > { %v2630_v37 = vpop.f32.mrb[1].mxu0  ;;  %v1591_v38 = vsel %vm1406_vm2, %v1447_v36, -inf }
 0x4b0   : > { %1592 = vmax.xlane.f32.xlu1 %v1591_v38  ;;  %v1450_v13 = vpop.f32.mrb[2].mxu0  ;;  %v1493_v17 = vpop.f32.mrb[8].mxu1 }
 0x4b1   : > { %v2631_v19 = vpop.f32.mrb[3].mxu0  ;;  %v2636_v40 = vpop.f32.mrb[9].mxu1  ;;  %v1594_v41 = vsel %vm1406_vm2, %v1493_v17, -inf }
 0x4b2   : > { %1595 = vmax.xlane.f32.xlu0 %v1594_v41  ;;  %v1496_v23 = vpop.f32.mrb[10].mxu1 }
 0x4b3   : > { %v2637_v42 = vpop.f32.mrb[11].mxu1 }
 0x4b6   : > { %v1539_v43 = vpop.f32.mrb[4].mxu0 }
 0x4b7   : > { %v2642_v44 = vpop.f32.mrb[5].mxu0  ;;  %v1597_v45 = vsel %vm1406_vm2, %v1539_v43, -inf }
 0x4b8   : > { %v1542_v46 = vpop.f32.mrb[6].mxu0  ;;  %1598 = vmax.xlane.f32.xlu0 %v1597_v45  ;;  %v1585_v47 = vpop.f32.mrb[12].mxu1 }
 0x4b9   : > { %v2643_v48 = vpop.f32.mrb[7].mxu0  ;;  %v2648_v49 = vpop.f32.mrb[13].mxu1  ;;  %v1600_v50 = vsel %vm1406_vm2, %v1585_v47, -inf }
 0x4ba   : > { %1601 = vmax.xlane.f32.xlu1 %v1600_v50  ;;  %v1588_v51 = vpop.f32.mrb[14].mxu1 }
 0x4bb   : > { %v2649_v52 = vpop.f32.mrb[15].mxu1 }
 0x4cb   : > { %1241 = vrot.lane.b32.xlu1 %v1237_v55, %s3519_s5 }
 0x53d   : > { %v1593_v56 = vpop.xlane.xlu1 %1592 }
 0x53e   : > { %v1603_v57 = vsub.f32 %v1447_v36, %v1593_v56 }
 0x53f   : > { %v1596_v58 = vpop.xlane.xlu0 %1595 }
 0x540   : > { %v1607_v59 = vmul.f32 1.442695, %v1603_v57  ;;  %v1604_v60 = vsub.f32 %v1493_v17, %v1596_v58 }
 0x542   : > { %2920 = vpow2.f32 %v1607_v59  ;;  %v1609_v61 = vmul.f32 1.442695, %v1604_v60 }
 0x544   : > { %2922 = vpow2.f32 %v1609_v61 }
 0x545   : > { %v1599_v4 = vpop.xlane.xlu0 %1598 }
 0x546   : > { %v1605_v6 = vsub.f32 %v1539_v43, %v1599_v4 }
 0x547   : > { %v1602_v5 = vpop.xlane.xlu1 %1601 }
 0x548   : > { %v1606_v7 = vsub.f32 %v1585_v47, %v1602_v5  ;;  %v1611_v8 = vmul.f32 1.442695, %v1605_v6 }
 0x54a   : > { %v1613_v9 = vmul.f32 1.442695, %v1606_v7  ;;  %2924 = vpow2.f32 %v1611_v8 }
 0x54b   : > { %v1242_v21 = vpop.permute.xlu1 %1241 }
 0x54c   : > { %v4230_v62 = vpop.eup %2920  ;;  %2926 = vpow2.f32 %v1613_v9  ;;  %v1259_v24 = vrot.slane %v1242_v21, %v4124_v22 }
 0x54d   : > { %v1615_v63 = vsel %vm1406_vm2, %v4230_v62, 0.0 }
 0x54e   : > { %v4234_v1 = vpop.eup %2922  ;;  %1616 = vadd.xlane.f32.xlu0 %v1615_v63  ;;  %v1260_v27 = vcombine.low %v1251_v25, %v1259_v24  ;;  %v1261_v29 = vcombine.high %v1251_v25, %v1259_v24 }
 0x54f   : > { %v1618_v2 = vsel %vm1406_vm2, %v4234_v1, 0.0 }
 0x550   : > { %1619 = vadd.xlane.f32.xlu1 %v1618_v2  ;;  %v1268_v31 = vrot.slane %v1260_v27, %v4127_v26  ;;  %v1275_v33 = vrot.slane %v1261_v29, %v4127_v26 }
 0x552   : > { %v1276_v12 = vcombine.high %v1268_v31, %v3522_v39  ;;  %v1277_v36 = vcombine.high %v1275_v33, %v3522_v39  ;;  %v1316_v13 = vshrl.u32 %v1268_v31, 16  ;;  %v1332_v19 = vshrl.u32 %v1275_v33, 16 }
 0x554   : > { %v4240_v11 = vpop.eup %2924  ;;  %v1324_v17 = vshrl.u32 %v1276_v12, 16  ;;  %v1340_v43 = vshrl.u32 %v1277_v36, 16 }
 0x555   : > { %v1621_v16 = vsel %vm1406_vm2, %v4240_v11, 0.0 }
 0x556   : > { %v4242_v15 = vpop.eup %2926 }
 0x557   : > { %v1624_v20 = vsel %vm1406_vm2, %v4242_v15, 0.0 }
 0x561   : > { %1243 = vrot.lane.b32.xlu1 %v1237_v55, %s3516_s17  ;;  %s2259_s17 = scalar_lea.sflag [#allocation4], %s4056_s20 }
 0x564   : > { %1239 = vrot.lane.b32.xlu0 %v1237_v55, %s3517_s25  ;;  %s3392_s25 = scalar_lea.vmem %s4331_s16, 128 }
 0x565   : > { %p3393_p9 = scmp.ne.s32.totalorder %s4331_s16, %s3392_s25  ;;  %p3400_p2 = scmp.lt.s32.totalorder %s3398_s8, %s3392_s25 }
 0x567   : > { %p3394_p13 = pnand %p3393_p9, %p4466_p12  ;;  %p3401_p4 = por %p3400_p2, %p3399_p3 }
 0x569   : > { %p3395_p1 = pneg %p3394_p13 }
 0x56b   : > { %p3402_p10 = pnand %p3401_p4, %p3395_p1 }
 0x583   : > { %1622 = vadd.xlane.f32.xlu0 %v1621_v16 }
 0x585   : > { %1625 = vadd.xlane.f32.xlu1 %v1624_v20 }
 0x5db   : > { %v1617_v28 = vpop.xlane.xlu0 %1616 }
 0x5dc   : > { %2928 = vrcp.f32 %v1617_v28 }
 0x5dd   : > { %v1620_v30 = vpop.xlane.xlu1 %1619 }
 0x5de   : > { %2930 = vrcp.f32 %v1620_v30 }
 0x5df   : > { %v1240_v32 = vpop.permute.xlu0 %1239 }
 0x5e0   : > { %v1285_v35 = vrot.slane %v1240_v32, %v4124_v22 }
 0x5e1   : > { %v1244_v34 = vpop.permute.xlu1 %1243 }
 0x5e2   : > { %v1293_v10 = vrot.slane %v1244_v34, %v4124_v22 }
 0x5e4   : > { %v1294_v14 = vcombine.low %v1285_v35, %v1293_v10  ;;  %v1295_v18 = vcombine.high %v1285_v35, %v1293_v10 }
 0x5e6   : > { %v1302_v37 = vrot.slane %v1294_v14, %v4127_v26  ;;  %v1309_v38 = vrot.slane %v1295_v18, %v4127_v26  ;;  %v2929_v4 = vpop.eup %2928 }
 0x5e7   : > { %v1631_v9 = vmul.f32 %v2929_v4, %v4230_v62 }
 0x5e8   : > { %v1310_v40 = vcombine.high %v1302_v37, %v3522_v39  ;;  %v1311_v41 = vcombine.high %v1309_v38, %v3522_v39  ;;  %v1314_v23 = vpack.i.b16 %v1302_v37, %v1268_v31  ;;  %v1317_v42 = vshrl.u32 %v1302_v37, 16  ;;  %v2931_v7 = vpop.eup %2930 }
 0x5e9   : > { %v1330_v44 = vpack.i.b16 %v1309_v38, %v1275_v33  ;;  %v1333_v45 = vshrl.u32 %v1309_v38, 16  ;;  %v1632_v25 = vmul.f32 %v2931_v7, %v4234_v1  ;;  %v1635_v33 = vpack.c.bf16 %v1631_v9, %v1631_v9 }
 0x5ea   : > { %v1318_v46 = vpack.i.b16 %v1317_v42, %v1316_v13  ;;  %v1322_v47 = vpack.i.b16 %v1310_v40, %v1276_v12  ;;  %v1325_v48 = vshrl.u32 %v1310_v40, 16  ;;  %v1338_v49 = vpack.i.b16 %v1311_v41, %v1277_v36 }
 0x5eb   : > { %v1334_v50 = vpack.i.b16 %v1333_v45, %v1332_v19  ;;  %v1341_v51 = vshrl.u32 %v1311_v41, 16  ;;  %v1344_v52 = vcombine.low %v1314_v23, %v1330_v44  ;;  %v1636_v34 = vpack.c.bf16 %v1632_v25, %v1632_v25 }
 0x5ec   : > { %v1326_v53 = vpack.i.b16 %v1325_v48, %v1324_v17  ;;  %v1352_v54 = vcombine.low %v1322_v47, %v1338_v49 }
 0x5ed   : > { %v1342_v55 = vpack.i.b16 %v1341_v51, %v1340_v43  ;;  %v1369_v56 = vcombine.low %v1318_v46, %v1334_v50  ;;  %v1351_v57 = vrot.slane %v1344_v52, %v4124_v22 }
 0x5ee   : > { %v1359_v58 = vrot.slane %v1352_v54, %v4124_v22 }
 0x5ef   : > { %v1377_v59 = vcombine.low %v1326_v53, %v1342_v55  ;;  %v1376_v61 = vrot.slane %v1369_v56, %v4124_v22 }
 0x5f0   : > { %v1360_v60 = vcombine.low %v1351_v57, %v1359_v58 }
 0x5f1   : > { %v1384_v63 = vrot.slane %v1377_v59, %v4124_v22 }
 0x5f2   : > { %v1367_v2 = vrot.slane %v1360_v60, %v4127_v26 }
 0x5f3   : > { %v1385_v5 = vcombine.low %v1376_v61, %v1384_v63  ;;  %v2912_v63 = vld [vmem:[#allocation13] sm:$0xff]  }
 0x5f4   : > { %v1368_v6 = vcombine.high %v1367_v2, %v3522_v39  ;;  %v1397_v20 = vshrl.u32 %v1367_v2, 16 }
 0x5f5   : > { %v1392_v8 = vrot.slane %v1385_v5, %v4127_v26 }
 0x5f6   : > { %v1403_v27 = vshrl.u32 %v1368_v6, 16 }
 0x5f7   : > { %v1396_v16 = vpack.i.b16 %v1392_v8, %v1367_v2  ;;  %v1398_v21 = vshrl.u32 %v1392_v8, 16  ;;  %v1393_v24 = vcombine.high %v1392_v8, %v3522_v39 }
 0x5f9   : > { %v1644_v28 = vsel %vm1642_vm3, %v1396_v16, 0  ;;  %v1399_v29 = vpack.i.b16 %v1398_v21, %v1397_v20  ;;  %v1402_v30 = vpack.i.b16 %v1393_v24, %v1368_v6  ;;  %v1404_v31 = vshrl.u32 %v1393_v24, 16  ;;  %v2913_v20 = vld [vmem:[#allocation13 + $0x8] sm:$0xff]  }
 0x5fa   : > { %2651 = vmatpush3.bf16.msra.mxu0 %v1644_v28 }
 0x5fb   : > { %v1690_v32 = vsel %vm1642_vm3, %v1399_v29, 0  ;;  %2662 = vmatprep.subr.bf16.mxu0 %v3514_v0  ;;  %v1405_v62 = vpack.i.b16 %v1404_v31, %v1403_v27  ;;  %v1736_v39 = vsel %vm1642_vm3, %v1402_v30, 0 }
 0x5fc   : > { %2657 = vmatpush3.bf16.msra.mxu1 %v1690_v32 }
 0x5fd   : > { %2653 = vmatmul.mubr.msk.bf16.vlgmr.msra.gmra.mrb[8].mxu0 %vm1406_vm2, %v1635_v33  ;;  %2668 = vmatprep.subr.bf16.mxu1 %v3514_v0  ;;  %v1782_v1 = vsel %vm1642_vm3, %v1405_v62, 0 }
 0x5fe   : > { %2663 = vmatpush3.bf16.msra.mxu0 %v1736_v39  ;;  %2664 = vmatprep.mubr.msk.bf16.mxu0 %vm3515_vm0, %v3514_v0 }
 0x5ff   : > { %2659 = vmatmul.mubr.msk.bf16.vlgmr.msra.gmra.mrb[16].mxu1 %vm1406_vm2, %v1636_v34  ;;  %2674 = vmatprep.subr.bf16.mxu0 %v3514_v0 }
 0x600   : > { %2669 = vmatpush3.bf16.msra.mxu1 %v1782_v1  ;;  %2670 = vmatprep.mubr.msk.bf16.mxu1 %vm3515_vm0, %v3514_v0 }
 0x601   : > { %2682 = vmatprep.subr.bf16.mxu1 %v3514_v0 }
 0x610   : > { %v1623_v35 = vpop.xlane.xlu0 %1622 }
 0x611   : > { %2932 = vrcp.f32 %v1623_v35 }
 0x612   : > { %v1626_v10 = vpop.xlane.xlu1 %1625 }
 0x613   : > { %2934 = vrcp.f32 %v1626_v10 }
 0x61b   : > { %v2933_v12 = vpop.eup %2932 }
 0x61c   : > { %v1633_v14 = vmul.f32 %v2933_v12, %v4240_v11 }
 0x61d   : > { %v2935_v18 = vpop.eup %2934 }
 0x61e   : > { %v1634_v36 = vmul.f32 %v2935_v18, %v4242_v15  ;;  %v1637_v37 = vpack.c.bf16 %v1633_v14, %v1633_v14 }
 0x620   : > { %2665 = vmatmul.mubr.msk.bf16.vlgmr.msra.gmra.mrb[12].mxu0 %vm1406_vm2, %v1637_v37  ;;  %v1638_v38 = vpack.c.bf16 %v1634_v36, %v1634_v36 }
 0x621   : > { %2678 = vmatprep.mubr.msk.bf16.mxu0 %vm3515_vm0, %v3514_v0  ;;  %2675 = vmatpush3.bf16.msra.mxu0 %v2912_v63 }
 0x622   : > { %2671 = vmatmul.mubr.msk.bf16.vlgmr.msra.gmra.mrb[20].mxu1 %vm1406_vm2, %v1638_v38  ;;  %2676 = vmatprep.subr.bf16.mxu0 %v3514_v0  ;;  %v2555_v38 = vld [vmem:[#allocation14] ss:$0 sm:$0xff] }
 0x623   : > { %2686 = vmatprep.mubr.msk.bf16.mxu1 %vm3515_vm0, %v3514_v0 }
 0x625   : > { %2677 = vmatpush3.bf16.msra.mxu0 %v2913_v20 }
 0x626   : > { %2690 = vmatprep.subr.bf16.mxu0 %v3514_v0 }
 0x6d0   : > { %v1680_v13 = vpop.f32.mrb[8].mxu0 }
 0x6d1   : > { %v2654_v17 = vpop.f32.mrb[9].mxu0 }
 0x6d2   : > { %v1683_v19 = vpop.f32.mrb[10].mxu0  ;;  %v1726_v40 = vpop.f32.mrb[16].mxu1 }
 0x6d3   : > { %v2655_v11 = vpop.f32.mrb[11].mxu0  ;;  %v2660_v41 = vpop.f32.mrb[17].mxu1 }
 0x6d4   : > { %v1729_v23 = vpop.f32.mrb[18].mxu1 }
 0x6d5   : > { %v2661_v15 = vpop.f32.mrb[19].mxu1 }
 0x6f3   : > { %v1772_v42 = vpop.f32.mrb[12].mxu0 }
 0x6f4   : > { %v1824_v43 = vcombine.low %v1680_v13, %v1772_v42  ;;  %v1825_v44 = vcombine.high %v1680_v13, %v1772_v42  ;;  %v2666_v45 = vpop.f32.mrb[13].mxu0 }
 0x6f5   : > { %v1775_v46 = vpop.f32.mrb[14].mxu0  ;;  %v1818_v47 = vpop.f32.mrb[20].mxu1 }
 0x6f6   : > { %v1840_v48 = vcombine.low %v1726_v40, %v1818_v47  ;;  %v1841_v49 = vcombine.high %v1726_v40, %v1818_v47  ;;  %v2667_v50 = vpop.f32.mrb[15].mxu0  ;;  %v2672_v51 = vpop.f32.mrb[21].mxu1  ;;  %v1832_v53 = vrot.slane %v1824_v43, %v4124_v22  ;;  %v1839_v54 = vrot.slane %v1825_v44, %v4124_v22  ;;  %v2914_v46 = vld [vmem:[#allocation19] sm:$0xff]   ;;  %v2915_v47 = vld [vmem:[#allocation19 + $0x8] sm:$0xff]  }
 0x6f7   : > { %v1821_v52 = vpop.f32.mrb[22].mxu1  ;;  %2683 = vmatpush3.bf16.msra.mxu1 %v2914_v46 }
 0x6f8   : > { %v1848_v55 = vrot.slane %v1840_v48, %v4124_v22  ;;  %v1855_v56 = vrot.slane %v1841_v49, %v4124_v22  ;;  %v2673_v57 = vpop.f32.mrb[23].mxu1  ;;  %2684 = vmatprep.subr.bf16.mxu1 %v3514_v0  ;;  %v2916_v48 = vld [vmem:[#allocation22] sm:$0xff]   ;;  %v2917_v49 = vld [vmem:[#allocation22 + $0x8] sm:$0xff]  }
 0x6fa   : > { %v1856_v58 = vcombine.low %v1832_v53, %v1848_v55  ;;  %v1857_v59 = vcombine.high %v1832_v53, %v1848_v55  ;;  %v1872_v60 = vcombine.low %v1839_v54, %v1855_v56  ;;  %v1873_v61 = vcombine.high %v1839_v54, %v1855_v56  ;;  %v2559_v53 = vld [vmem:[#allocation16] ss:$0 sm:$0xff]  ;;  %v2560_v55 = vld [vmem:[#allocation17] ss:$0 sm:$0xff] }
 0x6fb   : > { %2685 = vmatpush3.bf16.msra.mxu1 %v2915_v47 }
 0x6fc   : > { %v1864_v2 = vrot.slane %v1856_v58, %v4127_v26  ;;  %v1871_v4 = vrot.slane %v1857_v59, %v4127_v26  ;;  %v1880_v5 = vrot.slane %v1872_v60, %v4127_v26  ;;  %v1887_v6 = vrot.slane %v1873_v61, %v4127_v26  ;;  %v2918_v59 = vld [vmem:[#allocation22 + $0x10] sm:$0xff]   ;;  %v2919_v60 = vld [vmem:[#allocation22 + $0x18] sm:$0xff]  }
 0x6fd   : > { %v2561_v61 = vld [vmem:[#allocation20] ss:$0 sm:$0xff] }
 0x6fe   : > { %v1892_v7 = vcombine.low %v1864_v2, %v1871_v4  ;;  %v2553_v8 = vcombine.high %v1864_v2, %v1871_v4  ;;  %v1908_v9 = vcombine.low %v1880_v5, %v1887_v6  ;;  %v2554_v16 = vcombine.high %v1880_v5, %v1887_v6 }
 0x700   : > { %v1899_v21 = vrot.slane %v1892_v7, %v4124_v22  ;;  %v1907_v24 = vrot.slane %v2553_v8, %v4124_v22  ;;  %v1915_v25 = vrot.slane %v1908_v9, %v4124_v22  ;;  %v1923_v27 = vrot.slane %v2554_v16, %v4124_v22  ;;  %v2565_v9 = vld [vmem:[#allocation23] ss:$0 sm:$0xff] }
 0x702   : > { %v1925_v28 = vcombine.high %v1899_v21, %v1907_v24  ;;  %v1941_v29 = vcombine.high %v1915_v25, %v1923_v27  ;;  %v1924_v30 = vcombine.low %v1899_v21, %v1907_v24  ;;  %v1940_v31 = vcombine.low %v1915_v25, %v1923_v27 }
 0x704   : > { %v1939_v32 = vrot.slane %v1925_v28, %v4127_v26  ;;  %v1955_v33 = vrot.slane %v1941_v29, %v4127_v26  ;;  %v1932_v62 = vrot.slane %v1924_v30, %v4127_v26  ;;  %v1948_v39 = vrot.slane %v1940_v31, %v4127_v26 }
 0x706   : > { %v1958_v34 = vcombine.low %v1939_v32, %v1955_v33  ;;  %v1957_v1 = vcombine.high %v1932_v62, %v1948_v39  ;;  %v1959_v35 = vcombine.high %v1939_v32, %v1955_v33  ;;  %v1956_v10 = vcombine.low %v1932_v62, %v1948_v39 }
 0x708   : > { %1965 = vrot.lane.b32.xlu1 %v1958_v34, %s3523_s21  ;;  %1961 = vrot.lane.b32.xlu0 %v1957_v1, %s3524_s2  ;;  %v2571_v1 = vld [vmem:[#allocation25] ss:$0 sm:$0xff] }
 0x70c   : > { %1969 = vrot.lane.b32.xlu0 %v1959_v35, %s3525_s19 }
 0x77a   : > { %v1962_v22 = vpop.permute.xlu0 %1961  ;;  %v1966_v12 = vpop.permute.xlu1 %1965 }
 0x77b   : > { %v1972_v14 = vsel %vm1406_vm2, %v1956_v10, %v1962_v22  ;;  %v2572_v10 = vld [vmem:[#allocation26] ss:$0 sm:$0xff] }
 0x77c   : > { %v1974_v36 = vsel %vm1973_vm4, %v1972_v14, %v1966_v12 }
 0x77e   : > { %v1970_v18 = vpop.permute.xlu0 %1969 }
 0x77f   : > { %v1976_v37 = vsel %vm1975_vm5, %v1974_v36, %v1970_v18 }
 0x780   : > { %v1977_v26 = vpack.c.bf16 %v1976_v37, %v1976_v37 }
 0x782   : > { %2679 = vmatmul.mubr.msk.bf16.vlgmr.msra.gmra.mrb[16].mxu0 %vm788_vm1, %v1977_v26 }
 0x783   : > { %2698 = vmatprep.mubr.msk.bf16.mxu0 %vm3515_vm0, %v3514_v0  ;;  %2691 = vmatpush3.bf16.msra.mxu0 %v2916_v48 }
 0x784   : > { %2692 = vmatprep.subr.bf16.mxu0 %v3514_v0 }
 0x787   : > { %2693 = vmatpush3.bf16.msra.mxu0 %v2917_v49 }
 0x788   : > { %2694 = vmatprep.subr.bf16.mxu0 %v3514_v0 }
 0x78b   : > { %2695 = vmatpush3.bf16.msra.mxu0 %v2918_v59 }
 0x78c   : > { %2696 = vmatprep.subr.bf16.mxu0 %v3514_v0 }
 0x78f   : > { %2697 = vmatpush3.bf16.msra.mxu0 %v2919_v60 }
 0x855   : > { %v2038_v13 = vpop.f32.mrb[16].mxu0 }
 0x856   : > { %v2039_v17 = vadd.f32 %v2555_v38, %v2038_v13  ;;  %v2680_v19 = vpop.f32.mrb[17].mxu0 }
 0x857   : > { %v2041_v40 = vpop.f32.mrb[18].mxu0 }
 0x858   : > { %v2681_v11 = vpop.f32.mrb[19].mxu0  ;;  %v2044_v41 = vadd.f32 %v2039_v17, %v4113_v3 }
 0x85a   : > { %v2047_v23 = vsel %vm788_vm1, %v2044_v41, 0.0 }
 0x85b   : > { %2048 = vadd.xlane.f32.xlu1 %v2047_v23 }
 0x8e8   : > { %v2049_v15 = vpop.xlane.xlu1 %2048 }
 0x8e9   : > { %v2051_v42 = vmul.f32 0.03125, %v2049_v15 }
 0x8eb   : > { %v2052_v43 = vsub.f32 %v2044_v41, %v2051_v42 }
 0x8ed   : > { %v2053_v44 = vmul.f32 %v2052_v43, %v2052_v43 }
 0x8ef   : > { %v2054_v45 = vsel %vm788_vm1, %v2053_v44, 0.0 }
 0x8f0   : > { %2055 = vadd.xlane.f32.xlu0 %v2054_v45 }
 0x97d   : > { %v2056_v3 = vpop.xlane.xlu0 %2055 }
 0x97e   : > { %v2057_v50 = vmul.f32 0.03125, %v2056_v3 }
 0x980   : > { %v2058_v51 = vadd.f32 1e-05, %v2057_v50 }
 0x982   : > { %2936 = vrsqrt.f32 %v2058_v51 }
 0x98c   : > { %v2937_v52 = vpop.eup %2936 }
 0x98d   : > { %v2060_v54 = vmul.f32 %v2937_v52, %v2052_v43 }
 0x98f   : > { %v2067_v56 = vmul.f32 %v2559_v53, %v2060_v54 }
 0x991   : > { %v2074_v57 = vadd.f32 %v2560_v55, %v2067_v56 }
 0x993   : > { %v2075_v58 = vpack.c.bf16 %v2074_v57, %v2074_v57 }
 0x995   : > { %2687 = vmatmul.mubr.msk.bf16.vlgmr.msra.gmra.mrb[24].mxu1 %vm788_vm1, %v2075_v58 }
 0xa68   : > { %v2136_v63 = vpop.f32.mrb[24].mxu1 }
 0xa69   : > { %v2137_v2 = vadd.f32 %v2561_v61, %v2136_v63  ;;  %v2688_v4 = vpop.f32.mrb[25].mxu1 }
 0xa6a   : > { %v2139_v5 = vpop.f32.mrb[26].mxu1 }
 0xa6b   : > { %v2142_v6 = vmax.f32 %v2137_v2, 0.0  ;;  %v2689_v7 = vpop.f32.mrb[27].mxu1 }
 0xa6d   : > { %v2143_v8 = vpack.c.bf16 %v2142_v6, %v2142_v6 }
 0xa6f   : > { %2699 = vmatmul.mubr.msk.bf16.vlgmr.msra.gmra.mrb[20].mxu0 %vm2183_vm6, %v2143_v8 }
 0xb42   : > { %v2221_v16 = vpop.f32.mrb[20].mxu0 }
 0xb43   : > { %v2222_v20 = vadd.f32 %v2565_v9, %v2221_v16  ;;  %v2700_v21 = vpop.f32.mrb[21].mxu0 }
 0xb44   : > { %v2224_v24 = vpop.f32.mrb[22].mxu0 }
 0xb45   : > { %v2701_v25 = vpop.f32.mrb[23].mxu0  ;;  %v2227_v27 = vadd.f32 %v2222_v20, %v2074_v57 }
 0xb47   : > { %v2230_v0 = vsel %vm788_vm1, %v2227_v27, 0.0 }
 0xb48   : > { %2231 = vadd.xlane.f32.xlu0 %v2230_v0 }
 0xbd5   : > { %v2232_v28 = vpop.xlane.xlu0 %2231 }
 0xbd6   : > { %v2233_v29 = vmul.f32 0.03125, %v2232_v28 }
 0xbd8   : > { %v2234_v30 = vsub.f32 %v2227_v27, %v2233_v29 }
 0xbda   : > { %v2235_v31 = vmul.f32 %v2234_v30, %v2234_v30 }
 0xbdc   : > { %v2236_v32 = vsel %vm788_vm1, %v2235_v31, 0.0 }
 0xbdd   : > { %2237 = vadd.xlane.f32.xlu1 %v2236_v32 }
 0xc6a   : > { %v2238_v33 = vpop.xlane.xlu1 %2237 }
 0xc6b   : > { %v2239_v62 = vmul.f32 0.03125, %v2238_v33 }
 0xc6d   : > { %v2240_v39 = vadd.f32 1e-05, %v2239_v62 }
 0xc6f   : > { %2938 = vrsqrt.f32 %v2240_v39 }
 0xc79   : > { %v2939_v34 = vpop.eup %2938 }
 0xc7a   : > { %v2242_v35 = vmul.f32 %v2939_v34, %v2234_v30 }
 0xc7c   : > { %v2249_v22 = vmul.f32 %v2571_v1, %v2242_v35 }
 0xc7e   : > { %v2256_v12 = vadd.f32 %v2572_v10, %v2249_v22 }
 0xc80   : > { %2257 = vst.msk [vmem:[%s758_s6] sm:$0xff] %vm788_vm1, %v2256_v12 }
 0xc81   : > { %3405 = shalt.err (!%p3402_p10)
}
 0xc82   : > { %s3406_s20 = scalar_lea.hbm %s4329_s27, 128  ;;  %s3410_s2 = scalar_lea.hbm %s4465_s7, 256 }
 0xc83   : > { %p3407_p5 = scmp.ne.s32.totalorder %s4329_s27, %s3406_s20  ;;  %p3411_p6 = scmp.lt.u32.totalorder %s4329_s27, %s4465_s7 }
 0xc84   : > { %p3412_p11 = scmp.lt.u32.totalorder %s3410_s2, %s3406_s20  ;;  %p3414_p9 = scmp.lt.u32.totalorder %s3406_s20, %s4329_s27 }
 0xc85   : > { %p3408_p7 = pnand %p3407_p5, %p4466_p12 }
 0xc86   : > { %p3413_p8 = por %p3412_p11, %p3411_p6 }
 0xc87   : > { %p3409_p0 = pneg %p3408_p7 }
 0xc88   : > { %p3415_p13 = por %p3414_p9, %p3413_p8 }
 0xc8a   : > { %p3416_p1 = pnand %p3415_p13, %p3409_p0 }
 0xc8c   : > { %3419 = shalt.err (!%p3416_p1)
}
 0xc8d   : > { %2762 = dma.vmem_to_hbm [thread:$0]  (%p4466_p12), %s4331_s16, 128, %s4329_s27, %s2259_s17  }
 0xc8e PF: > { %s4467_s6 = sld [smem:[#allocation40_spill]]  ;;  %p4468_p3 = scmp.ne.s32.totalorder %s4440_s23, 0 }
 0xc8f   : > { %p4469_p2 = scmp.ge.s32.totalorder %s3494_s24, 2 }
 0xc91   : > { %p2815_p4 = pnand %p4469_p2, %p4468_p3 }
 0xc94   : > { %s2284_s22 = sand.u32 1, %s4467_s6  }
 0xc95   : > { %s2285_s1 = scalar_lea.sflag [#allocation4], %s2284_s22 }
 0xc96   : > { %3477 = dma.done.wait (!%p2815_p4), %s2285_s1, 128  }
 0xc97   : > { %3479 = vsyncadd (!%p2815_p4), %s2285_s1, 4294967168  ;;  %s4470_s21 = sld [smem:[#allocation41_spill]]  ;;  %s4471_s22 = sld [smem:[#allocation42_spill]] }
 0xc98   : > { %p39_p10 = scmp.ge.s32.totalorder %s3949_s0, 4   ;;  %s4472_s23 = smov %s3960_s28 }
 0xc99   : > { %s4473_s24 = smov %s3949_s0 }
 0xc9a   :  { %41 = sbr.rel (!%p39_p10) target bundleno = 25 (0x19), region = 198 }
 0xca1   :  { %2290 = vsyncpa [#allocation3], 1 }
 0xca2   :  { %2292 = vsyncpa [#allocation3 + $0x1], 1 }
 0xca3   :  { %2293 = vsyncpa [#allocation6], 1 }
 0xca4   :  { %2295 = vsyncpa [#allocation6 + $0x1], 1 }
 0xca5   :  { %2296 = vsyncpa [#allocation9], 1 }
 0xca6   :  { %2297 = vsyncpa [#allocation12], 1 }
 0xca7   :  { %2298 = vsyncpa [#allocation15], 1 }
 0xca8   :  { %2299 = vsyncpa [#allocation18], 1 }
 0xca9   :  { %2300 = vsyncpa [#allocation21], 1 }
 0xcaa   :  { %2301 = vsyncpa [#allocation24], 1 }
 0xcab   :  { %2302 = vsyncpa [#allocation27], 1 }
 0xcac   :  { %2303 = vsyncpa [#allocation4], 1 }
 0xcad   :  { %2305 = vsyncpa [#allocation4 + $0x1], 1 }

</bundles_post_ra>
